<compile_context>
chip_gen: v7x
topology: tpu7x:2x2x1
jax: 0.10.0
libtpu: 0.0.40
codegen_flags: <defaults>
</compile_context>

<pallas_src>
import jax
import jax.numpy as jnp
from jax.experimental import pallas as pl
from jax.experimental.pallas import tpu as pltpu

IN_DIM = 28 * 28   # 784
IN_PAD = 896       # 7 * 128: lane-dense contraction dim for layer 1
HID = 512
OUT_DIM = 10
PAD_OUT = 128      # lane-dense padded logits width


def _round_up(x, m):
    return ((x + m - 1) // m) * m


def mlp_kernel(x_ref, w1_ref, b1_ref, w2_ref, b2_ref, w3_ref, b3_ref, o_ref):
    # x arrives f32; cast to bf16 in VMEM right before the MXU feed.
    x = x_ref[...].astype(jnp.bfloat16)
    # Layer 1: (TB,896)bf16 @ (896,512)bf16 -> f32 acc, +b1, ReLU
    h1 = jnp.dot(x, w1_ref[...], preferred_element_type=jnp.float32)
    h1 = jnp.maximum(h1 + b1_ref[...], 0.0).astype(jnp.bfloat16)
    # Layer 2: (TB,512) @ (512,512)
    h2 = jnp.dot(h1, w2_ref[...], preferred_element_type=jnp.float32)
    h2 = jnp.maximum(h2 + b2_ref[...], 0.0).astype(jnp.bfloat16)
    # Layer 3: (TB,512) @ (512,128)  (columns 10..127 are zero-padded)
    logits = jnp.dot(h2, w3_ref[...], preferred_element_type=jnp.float32)
    # bf16 store keeps the 128-wide output lane-dense while halving the writeback.
    o_ref[...] = (logits + b3_ref[...]).astype(o_ref.dtype)


def prepare_params(params):
    """Cast weights to bf16 (f32 biases); pad layer-1 K 784->896 and layer-3 N 10->128."""
    w1, b1, w2, b2, w3, b3 = params
    w1p = jnp.pad(w1, ((0, IN_PAD - IN_DIM), (0, 0)))
    w3p = jnp.pad(w3, ((0, 0), (0, PAD_OUT - OUT_DIM)))
    b3p = jnp.pad(b3, ((0, 0), (0, PAD_OUT - OUT_DIM)))
    return (w1p.astype(jnp.bfloat16), b1.astype(jnp.float32),
            w2.astype(jnp.bfloat16), b2.astype(jnp.float32),
            w3p.astype(jnp.bfloat16), b3p.astype(jnp.float32))


def mlp_forward(x_nchw, prepped, *, tb=1024):
    """x_nchw: (B, 1, 28, 28) float32. Returns logits (B, 10) float32."""
    w1p, b1, w2, b2, w3p, b3p = prepped
    B = x_nchw.shape[0]

    # nn.Flatten equivalent (row-major). Keep f32 — the bf16 cast happens in-kernel.
    x_flat = x_nchw.reshape(B, -1)

    # Batch tile: multiple of 8 for sublane alignment; capped so the grid has >= 2
    # steps whenever possible (so "parallel" can use both TensorCores on v7x).
    B8 = _round_up(B, 8)
    TB = min(tb, max(8, _round_up(B8 // 2, 8)))
    B_pad = _round_up(B, TB)

    # Single pad op: ragged batch rows + contraction dim 784 -> 896 (zeros).
    x_flat = jnp.pad(x_flat, ((0, B_pad - B), (0, IN_PAD - IN_DIM)))

    grid = (B_pad // TB,)

    # Weights / biases: same block index for every grid step -> DMA'd once, VMEM-resident.
    resident = lambda a: pl.BlockSpec(a.shape, lambda i: (0, 0))

    out = pl.pallas_call(
        mlp_kernel,
        out_shape=jax.ShapeDtypeStruct((B_pad, PAD_OUT), jnp.bfloat16),
        grid=grid,
        in_specs=[
            pl.BlockSpec((TB, IN_PAD), lambda i: (i, 0)),   # x tile (pipelined)
            resident(w1p), resident(b1),
            resident(w2), resident(b2),
            resident(w3p), resident(b3p),
        ],
        out_specs=pl.BlockSpec((TB, PAD_OUT), lambda i: (i, 0)),
        compiler_params=pltpu.CompilerParams(
            dimension_semantics=("parallel",),
            vmem_limit_bytes=32 << 20,
        ),
    )(x_flat, w1p, b1, w2, b2, w3p, b3p)

    return out[:B, :OUT_DIM].astype(jnp.float32)


def init_params(key):
    """Deterministic init mirroring nn.Linear's U(-1/sqrt(fan_in), 1/sqrt(fan_in)).
    Weights stored as (in, out) so the kernel computes x @ W directly."""
    ks = jax.random.split(key, 6)

    def linear(kw, kb, fan_in, fan_out):
        bound = 1.0 / jnp.sqrt(fan_in)
        w = jax.random.uniform(kw, (fan_in, fan_out), jnp.float32, -bound, bound)
        b = jax.random.uniform(kb, (1, fan_out), jnp.float32, -bound, bound)
        return w, b

    w1, b1 = linear(ks[0], ks[1], IN_DIM, HID)
    w2, b2 = linear(ks[2], ks[3], HID, HID)
    w3, b3 = linear(ks[4], ks[5], HID, OUT_DIM)
    return (w1, b1, w2, b2, w3, b3)


def reference_forward(x_nchw, prepped):
    """Same bf16-matmul / f32-accumulate math in plain JAX, for validation."""
    w1p, b1, w2, b2, w3p, b3p = prepped
    x = x_nchw.reshape(x_nchw.shape[0], -1)
    x = jnp.pad(x, ((0, 0), (0, IN_PAD - IN_DIM))).astype(jnp.bfloat16)
    h1 = jnp.maximum(jnp.dot(x, w1p, preferred_element_type=jnp.float32) + b1, 0.0)
    h1 = h1.astype(jnp.bfloat16)
    h2 = jnp.maximum(jnp.dot(h1, w2, preferred_element_type=jnp.float32) + b2, 0.0)
    h2 = h2.astype(jnp.bfloat16)
    out = (jnp.dot(h2, w3p, preferred_element_type=jnp.float32) + b3p).astype(jnp.bfloat16)
    return out[:, :OUT_DIM].astype(jnp.float32)


if __name__ == "__main__":
    key = jax.random.PRNGKey(0)
    k_x, k_p = jax.random.split(key)

    B = 8
    x = jax.random.normal(k_x, (B, 1, 28, 28), dtype=jnp.float32)  # NCHW like PyTorch
    params = init_params(k_p)
    prepped = prepare_params(params)

    logits = mlp_forward(x, prepped)
    logits = jax.block_until_ready(logits)

    ref = reference_forward(x, prepped)
    assert logits.shape == (B, OUT_DIM)
    assert jnp.allclose(logits, ref, atol=1e-2, rtol=1e-2), "mismatch vs JAX reference"

    print("KERNEL_OK")
</pallas_src>

<mosaic_0001>
module attributes {stable_mosaic.version = 11 : i64} {
  func.func @mlp_kernel(%arg0: i32, %arg1: memref<8x896xf32, #tpu.memory_space<vmem>>, %arg2: memref<896x512xbf16, #tpu.memory_space<vmem>>, %arg3: memref<1x512xf32, #tpu.memory_space<vmem>>, %arg4: memref<512x512xbf16, #tpu.memory_space<vmem>>, %arg5: memref<1x512xf32, #tpu.memory_space<vmem>>, %arg6: memref<512x128xbf16, #tpu.memory_space<vmem>>, %arg7: memref<1x128xf32, #tpu.memory_space<vmem>>, %arg8: memref<8x128xbf16, #tpu.memory_space<vmem>>) attributes {dimension_semantics = [#tpu.dimension_semantics<parallel>], iteration_bounds = array<i64: 1>, scalar_prefetch = 0 : i64, scratch_operands = 0 : i64, tpu.core_type = #tpu.core_type<tc>, window_params = [{transform_indices = @transform_0, window_bounds = array<i64: 8, 896>}, {pipeline_mode = #tpu.pipeline_mode<synchronous>, transform_indices = @transform_1, window_bounds = array<i64: 896, 512>}, {pipeline_mode = #tpu.pipeline_mode<synchronous>, transform_indices = @transform_2, window_bounds = array<i64: 1, 512>}, {pipeline_mode = #tpu.pipeline_mode<synchronous>, transform_indices = @transform_3, window_bounds = array<i64: 512, 512>}, {pipeline_mode = #tpu.pipeline_mode<synchronous>, transform_indices = @transform_4, window_bounds = array<i64: 1, 512>}, {pipeline_mode = #tpu.pipeline_mode<synchronous>, transform_indices = @transform_5, window_bounds = array<i64: 512, 128>}, {pipeline_mode = #tpu.pipeline_mode<synchronous>, transform_indices = @transform_6, window_bounds = array<i64: 1, 128>}, {transform_indices = @transform_7, window_bounds = array<i64: 8, 128>}]} {
    %c0 = arith.constant 0 : index
    %c0_0 = arith.constant 0 : index
    %0 = vector.load %arg1[%c0, %c0_0] : memref<8x896xf32, #tpu.memory_space<vmem>>, vector<8x896xf32>
    %1 = arith.truncf %0 : vector<8x896xf32> to vector<8x896xbf16>
    %c0_1 = arith.constant 0 : index
    %c0_2 = arith.constant 0 : index
    %2 = vector.load %arg2[%c0_1, %c0_2] : memref<896x512xbf16, #tpu.memory_space<vmem>>, vector<896x512xbf16>
    %cst = arith.constant dense<0.000000e+00> : vector<8x512xf32>
    %3 = tpu.matmul %1, %2, %cst {dimension_numbers = #tpu.dot_dimension_numbers<[1], [0], [0], [1], [0, 0, 1, 1], [], []>} : vector<8x896xbf16>, vector<896x512xbf16>, vector<8x512xf32> -> vector<8x512xf32>
    %c0_3 = arith.constant 0 : index
    %c0_4 = arith.constant 0 : index
    %4 = vector.load %arg3[%c0_3, %c0_4] : memref<1x512xf32, #tpu.memory_space<vmem>>, vector<1x512xf32>
    %5 = vector.broadcast %4 : vector<1x512xf32> to vector<8x512xf32>
    %6 = arith.addf %3, %5 : vector<8x512xf32>
    %cst_5 = arith.constant 0.000000e+00 : f32
    %7 = vector.broadcast %cst_5 : f32 to vector<8x512xf32>
    %8 = arith.maximumf %6, %7 : vector<8x512xf32>
    %9 = arith.truncf %8 : vector<8x512xf32> to vector<8x512xbf16>
    %c0_6 = arith.constant 0 : index
    %c0_7 = arith.constant 0 : index
    %10 = vector.load %arg4[%c0_6, %c0_7] : memref<512x512xbf16, #tpu.memory_space<vmem>>, vector<512x512xbf16>
    %cst_8 = arith.constant dense<0.000000e+00> : vector<8x512xf32>
    %11 = tpu.matmul %9, %10, %cst_8 {dimension_numbers = #tpu.dot_dimension_numbers<[1], [0], [0], [1], [0, 0, 1, 1], [], []>} : vector<8x512xbf16>, vector<512x512xbf16>, vector<8x512xf32> -> vector<8x512xf32>
    %c0_9 = arith.constant 0 : index
    %c0_10 = arith.constant 0 : index
    %12 = vector.load %arg5[%c0_9, %c0_10] : memref<1x512xf32, #tpu.memory_space<vmem>>, vector<1x512xf32>
    %13 = vector.broadcast %12 : vector<1x512xf32> to vector<8x512xf32>
    %14 = arith.addf %11, %13 : vector<8x512xf32>
    %cst_11 = arith.constant 0.000000e+00 : f32
    %15 = vector.broadcast %cst_11 : f32 to vector<8x512xf32>
    %16 = arith.maximumf %14, %15 : vector<8x512xf32>
    %17 = arith.truncf %16 : vector<8x512xf32> to vector<8x512xbf16>
    %c0_12 = arith.constant 0 : index
    %c0_13 = arith.constant 0 : index
    %18 = vector.load %arg6[%c0_12, %c0_13] : memref<512x128xbf16, #tpu.memory_space<vmem>>, vector<512x128xbf16>
    %cst_14 = arith.constant dense<0.000000e+00> : vector<8x128xf32>
    %19 = tpu.matmul %17, %18, %cst_14 {dimension_numbers = #tpu.dot_dimension_numbers<[1], [0], [0], [1], [0, 0, 1, 1], [], []>} : vector<8x512xbf16>, vector<512x128xbf16>, vector<8x128xf32> -> vector<8x128xf32>
    %c0_15 = arith.constant 0 : index
    %c0_16 = arith.constant 0 : index
    %20 = vector.load %arg7[%c0_15, %c0_16] : memref<1x128xf32, #tpu.memory_space<vmem>>, vector<1x128xf32>
    %21 = vector.broadcast %20 : vector<1x128xf32> to vector<8x128xf32>
    %22 = arith.addf %19, %21 : vector<8x128xf32>
    %23 = arith.truncf %22 : vector<8x128xf32> to vector<8x128xbf16>
    %c0_17 = arith.constant 0 : index
    %c0_18 = arith.constant 0 : index
    %24 = vector.load %arg8[%c0_17, %c0_18] : memref<8x128xbf16, #tpu.memory_space<vmem>>, vector<8x128xbf16>
    tpu.vector_store %arg8[%c0_17, %c0_18], %23 {strides = array<i32>} : memref<8x128xbf16, #tpu.memory_space<vmem>>, vector<8x128xbf16>,
    return
  }
  func.func @transform_0(%arg0: i32) -> (i32, i32) {
    %c0_i32 = arith.constant 0 : i32
    %c0_i32_0 = arith.constant 0 : i32
    return %arg0, %c0_i32 : i32, i32
  }
  func.func @transform_1(%arg0: i32) -> (i32, i32) {
    %c0_i32 = arith.constant 0 : i32
    %c0_i32_0 = arith.constant 0 : i32
    %c0_i32_1 = arith.constant 0 : i32
    return %c0_i32, %c0_i32_0 : i32, i32
  }
  func.func @transform_2(%arg0: i32) -> (i32, i32) {
    %c0_i32 = arith.constant 0 : i32
    %c0_i32_0 = arith.constant 0 : i32
    %c0_i32_1 = arith.constant 0 : i32
    return %c0_i32, %c0_i32_0 : i32, i32
  }
  func.func @transform_3(%arg0: i32) -> (i32, i32) {
    %c0_i32 = arith.constant 0 : i32
    %c0_i32_0 = arith.constant 0 : i32
    %c0_i32_1 = arith.constant 0 : i32
    return %c0_i32, %c0_i32_0 : i32, i32
  }
  func.func @transform_4(%arg0: i32) -> (i32, i32) {
    %c0_i32 = arith.constant 0 : i32
    %c0_i32_0 = arith.constant 0 : i32
    %c0_i32_1 = arith.constant 0 : i32
    return %c0_i32, %c0_i32_0 : i32, i32
  }
  func.func @transform_5(%arg0: i32) -> (i32, i32) {
    %c0_i32 = arith.constant 0 : i32
    %c0_i32_0 = arith.constant 0 : i32
    %c0_i32_1 = arith.constant 0 : i32
    return %c0_i32, %c0_i32_0 : i32, i32
  }
  func.func @transform_6(%arg0: i32) -> (i32, i32) {
    %c0_i32 = arith.constant 0 : i32
    %c0_i32_0 = arith.constant 0 : i32
    %c0_i32_1 = arith.constant 0 : i32
    return %c0_i32, %c0_i32_0 : i32, i32
  }
  func.func @transform_7(%arg0: i32) -> (i32, i32) {
    %c0_i32 = arith.constant 0 : i32
    %c0_i32_0 = arith.constant 0 : i32
    return %arg0, %c0_i32 : i32, i32
  }
}

</mosaic_0001>

<bundles_post_ra>
// kernel: tpu_custom_call.1
= control target key start
LH: loop header
LB: loop body
LE: loop exit
PB: predicated region body
PF: predicated region fallthrough
CT: control target
= control target key end

     0   :  { %12 = vsyncpa [#allocation3], 0  ;;  %s4434_s0 = inlined_call_operand.hbm [shape: f32[8,896], index: 0, kind: input, shape index: {}]   ;;  %s4435_s1 = inlined_call_operand.hbm [shape: bf16[896,512], index: 1, kind: input, shape index: {}]   ;;  %s4436_s2 = inlined_call_operand.vmem [shape: f32[1,512], index: 2, kind: input, shape index: {}]   ;;  %s4437_s3 = inlined_call_operand.hbm [shape: bf16[512,512], index: 3, kind: input, shape index: {}]   ;;  %s4438_s4 = inlined_call_operand.vmem [shape: f32[1,512], index: 4, kind: input, shape index: {}]   ;;  %s4439_s5 = inlined_call_operand.hbm [shape: bf16[512,128], index: 5, kind: input, shape index: {}]   ;;  %s4440_s6 = inlined_call_operand.vmem [shape: f32[1,128], index: 6, kind: input, shape index: {}]   ;;  %s4441_s7 = inlined_call_operand.hbm [shape: bf16[8,128], index: 7, kind: output, shape index: {}]  }
   0x1   :  { %13 = vsyncpa [#allocation6], 0 }
   0x2   :  { %14 = vsyncpa [#allocation9], 0 }
   0x3   :  { %15 = vsyncpa [#allocation4], 0  ;;  %s4278_s24 = smov [#allocation5]   ;;  %s4160_s28 = scalar_lea.hbm %s4435_s1, 28672 }
   0x4   :  { %s31_s25 = sshll.u32 %s4278_s24, 4  ;;  %p4161_p0 = scmp.ne.s32.totalorder %s4435_s1, %s4160_s28  ;;  %s32_s25 = int_to_ptr.vmem [resolvable:$true] %s31_s25 }
   0x5   :  { %p4164_p1 = scmp.lt.u32.totalorder %s4160_s28, %s4435_s1 }
   0x7   :  { %p4166_p2 = pnand %p4164_p1, %p4161_p0 }
   0x9   :  { %4169 = shalt.err (!%p4166_p2)
}
   0xa   :  { %s4170_s10 = scalar_lea.vmem %s32_s25, 28672  ;;  %p4175_p4 = scmp.lt.s32.totalorder %s32_s25, %s32_s25 }
   0xb   :  { %p4171_p3 = scmp.ne.s32.totalorder %s32_s25, %s4170_s10  ;;  %p4176_p5 = scmp.lt.s32.totalorder %s4170_s10, %s4170_s10 }
   0xd   :  { %p4177_p6 = por %p4176_p5, %p4175_p4 }
   0xf   :  { %p4178_p7 = pnand %p4177_p6, %p4171_p3 }
  0x11   :  { %4181 = shalt.err (!%p4178_p7)
}
  0x12   :  { %s4279_s11 = smov 256   ;;  %s4280_s12 = smov 16  }
  0x13   :  { %37 = dma.hbm_to_vmem [thread:$0]  %s4435_s1, 28672, %s32_s25, [#allocation6], %s4279_s11, %s4279_s11, %s4280_s12  }
  0x14   :  { %s4281_s15 = smov [#allocation2]   ;;  %s4282_s17 = smov [#allocation7]  }
  0x15   :  { %s22_s16 = sshll.u32 %s4281_s15, 4  ;;  %s45_s18 = sshll.u32 %s4282_s17, 4  ;;  %s23_s16 = int_to_ptr.vmem [resolvable:$true] %s22_s16  ;;  %s46_s18 = int_to_ptr.vmem [resolvable:$true] %s45_s18 }
  0x16   :  { %s4182_s21 = scalar_lea.hbm %s4434_s0, 896 }
  0x17   :  { %p4183_p8 = scmp.ne.s32.totalorder %s4434_s0, %s4182_s21  ;;  %p4186_p9 = scmp.lt.u32.totalorder %s4182_s21, %s4434_s0 }
  0x19   :  { %p4188_p10 = pnand %p4186_p9, %p4183_p8 }
  0x1b   :  { %4191 = shalt.err (!%p4188_p10)
}
  0x1c   :  { %s4192_s1 = scalar_lea.vmem %s23_s16, 896  ;;  %p4197_p12 = scmp.lt.s32.totalorder %s23_s16, %s23_s16 }
  0x1d   :  { %p4193_p11 = scmp.ne.s32.totalorder %s23_s16, %s4192_s1  ;;  %p4198_p13 = scmp.lt.s32.totalorder %s4192_s1, %s4192_s1 }
  0x1f   :  { %p4199_p0 = por %p4198_p13, %p4197_p12 }
  0x21   :  { %p4200_p1 = pnand %p4199_p0, %p4193_p11 }
  0x23   :  { %4203 = shalt.err (!%p4200_p1)
}
  0x24   :  { %25 = dma.hbm_to_vmem [thread:$0]  %s4434_s0, 896, %s23_s16, [#allocation3]  }
  0x25   :  { %s4204_s30 = scalar_lea.hbm %s4437_s3, 16384 }
  0x26   :  { %p4205_p2 = scmp.ne.s32.totalorder %s4437_s3, %s4204_s30  ;;  %p4208_p3 = scmp.lt.u32.totalorder %s4204_s30, %s4437_s3 }
  0x28   :  { %p4210_p4 = pnand %p4208_p3, %p4205_p2 }
  0x2a   :  { %4213 = shalt.err (!%p4210_p4)
}
  0x2b   :  { %s4214_s14 = scalar_lea.vmem %s46_s18, 16384  ;;  %p4219_p6 = scmp.lt.s32.totalorder %s46_s18, %s46_s18 }
  0x2c   :  { %p4215_p5 = scmp.ne.s32.totalorder %s46_s18, %s4214_s14  ;;  %p4220_p7 = scmp.lt.s32.totalorder %s4214_s14, %s4214_s14 }
  0x2e   :  { %p4221_p8 = por %p4220_p7, %p4219_p6 }
  0x30   :  { %p4222_p9 = pnand %p4221_p8, %p4215_p5 }
  0x32   :  { %4225 = shalt.err (!%p4222_p9)
}
  0x33   :  { %51 = dma.hbm_to_vmem [thread:$0]  %s4437_s3, 16384, %s46_s18, [#allocation6], %s4279_s11, %s4279_s11, %s4280_s12  }
  0x34   :  { %s4283_s16 = smov [#allocation8]   ;;  %s4226_s21 = scalar_lea.hbm %s4439_s5, 4096 }
  0x35   :  { %s59_s17 = sshll.u32 %s4283_s16, 4  ;;  %p4227_p10 = scmp.ne.s32.totalorder %s4439_s5, %s4226_s21  ;;  %s60_s17 = int_to_ptr.vmem [resolvable:$true] %s59_s17 }
  0x36   :  { %p4230_p11 = scmp.lt.u32.totalorder %s4226_s21, %s4439_s5 }
  0x38   :  { %p4232_p12 = pnand %p4230_p11, %p4227_p10 }
  0x3a   :  { %4235 = shalt.err (!%p4232_p12)
}
  0x3b   :  { %s4236_s1 = scalar_lea.vmem %s60_s17, 4096  ;;  %p4241_p0 = scmp.lt.s32.totalorder %s60_s17, %s60_s17 }
  0x3c   :  { %p4237_p13 = scmp.ne.s32.totalorder %s60_s17, %s4236_s1  ;;  %p4242_p1 = scmp.lt.s32.totalorder %s4236_s1, %s4236_s1 }
  0x3e   :  { %p4243_p2 = por %p4242_p1, %p4241_p0 }
  0x40   :  { %p4244_p3 = pnand %p4243_p2, %p4237_p13 }
  0x42   :  { %4247 = shalt.err (!%p4244_p3)
}
  0x43   :  { %s4284_s3 = smov 64   ;;  %s4285_s11 = smov 4  }
  0x44   :  { %65 = dma.hbm_to_vmem [thread:$0]  %s4439_s5, 4096, %s60_s17, [#allocation9], %s4284_s3, %s4284_s3, %s4285_s11  }
  0x45   :  { %4270 = dma.done.wait [#allocation3], 896  }
  0x46   :  { %4271 = vsyncadd [#allocation3], 4294966400 }
  0x47   :  { %4272 = dma.done.wait [#allocation6], 45056  }
  0x48   :  { %4273 = vsyncadd [#allocation6], 4294922240 }
  0x49   :  { %4274 = dma.done.wait [#allocation9], 4096  }
  0x4a   :  { %4275 = vsyncadd [#allocation9], 4294963200  ;;  %v3600_v0 = vld [vmem:[#allocation5 + $0x4] ss:$16 sps:$4 sm:$0xff]   ;;  %v3602_v1 = vld [vmem:[#allocation5 + $0xc] ss:$16 sps:$4 sm:$0xff]  }
  0x4b   :  { %1461 = vmatprep.subr.bf16.mxu0 %v3600_v0  ;;  %v3604_v2 = vld [vmem:[#allocation5] ss:$16 sps:$4 sm:$0xff]   ;;  %v3605_v3 = vld [vmem:[#allocation5 + $0x8] ss:$16 sps:$4 sm:$0xff]   ;;  %1625 = vmatprep.subr.bf16.mxu1 %v3602_v1  ;;  %v3606_v4 = vld [vmem:[#allocation5 + $0x24] ss:$16 sps:$4 sm:$0xff]  }
  0x4c   :  { %1462 = vmatpush1.bf16.msra.mxu0 %v3604_v2  ;;  %1626 = vmatpush1.bf16.msra.mxu1 %v3605_v3  ;;  %v3608_v5 = vld [vmem:[#allocation5 + $0x2c] ss:$16 sps:$4 sm:$0xff]   ;;  %v3610_v6 = vld [vmem:[#allocation5 + $0x20] ss:$16 sps:$4 sm:$0xff]   ;;  %v3611_v7 = vld [vmem:[#allocation5 + $0x28] ss:$16 sps:$4 sm:$0xff]  }
  0x4d   :  { %1463 = vmatprep.subr.bf16.mxu0 %v3606_v4  ;;  %1627 = vmatprep.subr.bf16.mxu1 %v3608_v5  ;;  %v3612_v8 = vld [vmem:[#allocation5 + $0x44] ss:$16 sps:$4 sm:$0xff]   ;;  %v3614_v9 = vld [vmem:[#allocation5 + $0x4c] ss:$16 sps:$4 sm:$0xff]   ;;  %v3616_v10 = vld [vmem:[#allocation5 + $0x40] ss:$16 sps:$4 sm:$0xff]  }
  0x4e   :  { %v3617_v11 = vld [vmem:[#allocation5 + $0x48] ss:$16 sps:$4 sm:$0xff]   ;;  %v3618_v12 = vld [vmem:[#allocation5 + $0x64] ss:$16 sps:$4 sm:$0xff]   ;;  %v3620_v13 = vld [vmem:[#allocation5 + $0x6c] ss:$16 sps:$4 sm:$0xff]  }
  0x4f   :  { %v3622_v14 = vld [vmem:[#allocation5 + $0x60] ss:$16 sps:$4 sm:$0xff]   ;;  %v3623_v15 = vld [vmem:[#allocation5 + $0x68] ss:$16 sps:$4 sm:$0xff]   ;;  %v3624_v16 = vld [vmem:[#allocation5 + $0x84] ss:$16 sps:$4 sm:$0xff]  }
  0x50   :  { %1464 = vmatpush1.bf16.msra.mxu0 %v3610_v6  ;;  %1628 = vmatpush1.bf16.msra.mxu1 %v3611_v7  ;;  %v3626_v17 = vld [vmem:[#allocation5 + $0x8c] ss:$16 sps:$4 sm:$0xff]   ;;  %v3628_v18 = vld [vmem:[#allocation5 + $0x80] ss:$16 sps:$4 sm:$0xff]   ;;  %v3629_v19 = vld [vmem:[#allocation5 + $0x88] ss:$16 sps:$4 sm:$0xff]  }
  0x51   :  { %1465 = vmatprep.subr.bf16.mxu0 %v3612_v8  ;;  %1629 = vmatprep.subr.bf16.mxu1 %v3614_v9  ;;  %v3630_v20 = vld [vmem:[#allocation5 + $0xa4] ss:$16 sps:$4 sm:$0xff]   ;;  %v3632_v21 = vld [vmem:[#allocation5 + $0xac] ss:$16 sps:$4 sm:$0xff]   ;;  %v3634_v22 = vld [vmem:[#allocation5 + $0xa0] ss:$16 sps:$4 sm:$0xff]  }
  0x52   :  { %v3635_v23 = vld [vmem:[#allocation5 + $0xa8] ss:$16 sps:$4 sm:$0xff]   ;;  %v3636_v24 = vld [vmem:[#allocation5 + $0xc4] ss:$16 sps:$4 sm:$0xff]   ;;  %v3638_v25 = vld [vmem:[#allocation5 + $0xcc] ss:$16 sps:$4 sm:$0xff]  }
  0x53   :  { %v3640_v26 = vld [vmem:[#allocation5 + $0xc0] ss:$16 sps:$4 sm:$0xff]   ;;  %v3641_v27 = vld [vmem:[#allocation5 + $0xc8] ss:$16 sps:$4 sm:$0xff]   ;;  %v3642_v28 = vld [vmem:[#allocation5 + $0xe4] ss:$16 sps:$4 sm:$0xff]  }
  0x54   :  { %1466 = vmatpush1.bf16.msra.mxu0 %v3616_v10  ;;  %1630 = vmatpush1.bf16.msra.mxu1 %v3617_v11  ;;  %v3644_v29 = vld [vmem:[#allocation5 + $0xec] ss:$16 sps:$4 sm:$0xff]   ;;  %v3646_v30 = vld [vmem:[#allocation5 + $0xe0] ss:$16 sps:$4 sm:$0xff]   ;;  %v3647_v31 = vld [vmem:[#allocation5 + $0xe8] ss:$16 sps:$4 sm:$0xff]  }
  0x55   :  { %1467 = vmatprep.subr.bf16.mxu0 %v3618_v12  ;;  %1631 = vmatprep.subr.bf16.mxu1 %v3620_v13  ;;  %v3648_v32 = vld [vmem:[#allocation5 + $0x104] ss:$16 sps:$4 sm:$0xff]   ;;  %v3650_v33 = vld [vmem:[#allocation5 + $0x10c] ss:$16 sps:$4 sm:$0xff]   ;;  %v3652_v34 = vld [vmem:[#allocation5 + $0x100] ss:$16 sps:$4 sm:$0xff]  }
  0x56   :  { %v3653_v35 = vld [vmem:[#allocation5 + $0x108] ss:$16 sps:$4 sm:$0xff]   ;;  %v3654_v36 = vld [vmem:[#allocation5 + $0x124] ss:$16 sps:$4 sm:$0xff]   ;;  %v3656_v37 = vld [vmem:[#allocation5 + $0x12c] ss:$16 sps:$4 sm:$0xff]  }
  0x57   :  { %v3658_v38 = vld [vmem:[#allocation5 + $0x120] ss:$16 sps:$4 sm:$0xff]   ;;  %v3659_v39 = vld [vmem:[#allocation5 + $0x128] ss:$16 sps:$4 sm:$0xff]   ;;  %v3660_v40 = vld [vmem:[#allocation5 + $0x144] ss:$16 sps:$4 sm:$0xff]  }
  0x58   :  { %1468 = vmatpush1.bf16.msra.mxu0 %v3622_v14  ;;  %1632 = vmatpush1.bf16.msra.mxu1 %v3623_v15  ;;  %v3662_v41 = vld [vmem:[#allocation5 + $0x14c] ss:$16 sps:$4 sm:$0xff]   ;;  %v3664_v42 = vld [vmem:[#allocation5 + $0x140] ss:$16 sps:$4 sm:$0xff]   ;;  %v3665_v43 = vld [vmem:[#allocation5 + $0x148] ss:$16 sps:$4 sm:$0xff]  }
  0x59   :  { %1469 = vmatprep.subr.bf16.mxu0 %v3624_v16  ;;  %1633 = vmatprep.subr.bf16.mxu1 %v3626_v17  ;;  %v3666_v44 = vld [vmem:[#allocation5 + $0x164] ss:$16 sps:$4 sm:$0xff]   ;;  %v3668_v45 = vld [vmem:[#allocation5 + $0x16c] ss:$16 sps:$4 sm:$0xff]   ;;  %v3670_v47 = vld [vmem:[#allocation5 + $0x160] ss:$16 sps:$4 sm:$0xff]  }
  0x5a   :  { %v82_v46 = vld [vmem:[#allocation2 + $0x8] sm:$0xff]  ;;  %v3671_v49 = vld [vmem:[#allocation5 + $0x168] ss:$16 sps:$4 sm:$0xff]   ;;  %v3674_v51 = vld [vmem:[#allocation5 + $0x18c] ss:$16 sps:$4 sm:$0xff]   ;;  %s4287_s29 = smov [#allocation10]  }
  0x5b   :  { %v89_v48 = vpack.c.bf16 %v82_v46, %v82_v46  ;;  %v3672_v50 = vld [vmem:[#allocation5 + $0x184] ss:$16 sps:$4 sm:$0xff]   ;;  %v3676_v52 = vld [vmem:[#allocation5 + $0x180] ss:$16 sps:$4 sm:$0xff]   ;;  %v3677_v53 = vld [vmem:[#allocation5 + $0x188] ss:$16 sps:$4 sm:$0xff]  }
  0x5c   :  { %1470 = vmatpush1.bf16.msra.mxu0 %v3628_v18  ;;  %1634 = vmatpush1.bf16.msra.mxu1 %v3629_v19  ;;  %v3678_v54 = vld [vmem:[#allocation5 + $0x1a4] ss:$16 sps:$4 sm:$0xff]   ;;  %v3680_v55 = vld [vmem:[#allocation5 + $0x1ac] ss:$16 sps:$4 sm:$0xff]   ;;  %v3682_v56 = vld [vmem:[#allocation5 + $0x1a0] ss:$16 sps:$4 sm:$0xff]  }
  0x5d   :  { %1471 = vmatprep.subr.bf16.mxu0 %v3630_v20  ;;  %1635 = vmatprep.subr.bf16.mxu1 %v3632_v21  ;;  %v3683_v57 = vld [vmem:[#allocation5 + $0x1a8] ss:$16 sps:$4 sm:$0xff]   ;;  %v3684_v58 = vld [vmem:[#allocation5 + $0x1c4] ss:$16 sps:$4 sm:$0xff]   ;;  %v3686_v59 = vld [vmem:[#allocation5 + $0x1cc] ss:$16 sps:$4 sm:$0xff]  }
  0x5e   :  { %1493 = vmatprep.mubr.bf16.mxu0 %v89_v48  ;;  %1657 = vmatprep.mubr.bf16.mxu1 %v89_v48  ;;  %v3688_v60 = vld [vmem:[#allocation5 + $0x1c0] ss:$16 sps:$4 sm:$0xff]   ;;  %v3689_v61 = vld [vmem:[#allocation5 + $0x1c8] ss:$16 sps:$4 sm:$0xff]   ;;  %v3690_v62 = vld [vmem:[#allocation5 + $0x1e4] ss:$16 sps:$4 sm:$0xff]  }
  0x5f   :  { %v3692_v63 = vld [vmem:[#allocation5 + $0x1ec] ss:$16 sps:$4 sm:$0xff]   ;;  %v3694_v0 = vld [vmem:[#allocation5 + $0x1e0] ss:$16 sps:$4 sm:$0xff]   ;;  %v3695_v1 = vld [vmem:[#allocation5 + $0x1e8] ss:$16 sps:$4 sm:$0xff]  }
  0x60   :  { %1472 = vmatpush1.bf16.msra.mxu0 %v3634_v22  ;;  %1636 = vmatpush1.bf16.msra.mxu1 %v3635_v23  ;;  %v81_v2 = vld [vmem:[#allocation2] sm:$0xff]  ;;  %v3698_v3 = vld [vmem:[#allocation5 + $0x204] ss:$16 sps:$4 sm:$0xff]   ;;  %v3696_v6 = vld [vmem:[#allocation5 + $0x200] ss:$16 sps:$4 sm:$0xff]   ;;  %s3110_s30 = sshll.u32 %s4287_s29, 4  ;;  %s3111_s30 = int_to_ptr.vmem [resolvable:$true] %s3110_s30 }
  0x61   :  { %1473 = vmatprep.subr.bf16.mxu0 %v3636_v24  ;;  %1637 = vmatprep.subr.bf16.mxu1 %v3638_v25  ;;  %v3701_v4 = vld [vmem:[#allocation5 + $0x20c] ss:$16 sps:$4 sm:$0xff]   ;;  %v88_v5 = vpack.c.bf16 %v81_v2, %v81_v2  ;;  %v3699_v7 = vld [vmem:[#allocation5 + $0x208] ss:$16 sps:$4 sm:$0xff]   ;;  %v3704_v8 = vld [vmem:[#allocation5 + $0x224] ss:$16 sps:$4 sm:$0xff]   ;;  %p4253_p5 = scmp.lt.s32.totalorder %s3111_s30, %s3111_s30 }
  0x62   :  { %v3707_v9 = vld [vmem:[#allocation5 + $0x22c] ss:$16 sps:$4 sm:$0xff]   ;;  %v3702_v10 = vld [vmem:[#allocation5 + $0x220] ss:$16 sps:$4 sm:$0xff]   ;;  %v3705_v11 = vld [vmem:[#allocation5 + $0x228] ss:$16 sps:$4 sm:$0xff]  }
  0x63   :  { %v3710_v12 = vld [vmem:[#allocation5 + $0x244] ss:$16 sps:$4 sm:$0xff]   ;;  %v3713_v13 = vld [vmem:[#allocation5 + $0x24c] ss:$16 sps:$4 sm:$0xff]   ;;  %v3708_v14 = vld [vmem:[#allocation5 + $0x240] ss:$16 sps:$4 sm:$0xff]  }
  0x64   :  { %1474 = vmatpush1.bf16.msra.mxu0 %v3640_v26  ;;  %1638 = vmatpush1.bf16.msra.mxu1 %v3641_v27  ;;  %v3711_v15 = vld [vmem:[#allocation5 + $0x248] ss:$16 sps:$4 sm:$0xff]   ;;  %v3716_v16 = vld [vmem:[#allocation5 + $0x264] ss:$16 sps:$4 sm:$0xff]   ;;  %v3719_v17 = vld [vmem:[#allocation5 + $0x26c] ss:$16 sps:$4 sm:$0xff]  }
  0x65   :  { %1475 = vmatprep.subr.bf16.mxu0 %v3642_v28  ;;  %1639 = vmatprep.subr.bf16.mxu1 %v3644_v29  ;;  %v3714_v18 = vld [vmem:[#allocation5 + $0x260] ss:$16 sps:$4 sm:$0xff]   ;;  %v3717_v19 = vld [vmem:[#allocation5 + $0x268] ss:$16 sps:$4 sm:$0xff]   ;;  %v3722_v20 = vld [vmem:[#allocation5 + $0x284] ss:$16 sps:$4 sm:$0xff]  }
  0x66   :  { %v3725_v21 = vld [vmem:[#allocation5 + $0x28c] ss:$16 sps:$4 sm:$0xff]   ;;  %v3720_v22 = vld [vmem:[#allocation5 + $0x280] ss:$16 sps:$4 sm:$0xff]   ;;  %v3723_v23 = vld [vmem:[#allocation5 + $0x288] ss:$16 sps:$4 sm:$0xff]  }
  0x67   :  { %v3728_v24 = vld [vmem:[#allocation5 + $0x2a4] ss:$16 sps:$4 sm:$0xff]   ;;  %v3731_v25 = vld [vmem:[#allocation5 + $0x2ac] ss:$16 sps:$4 sm:$0xff]   ;;  %v3726_v26 = vld [vmem:[#allocation5 + $0x2a0] ss:$16 sps:$4 sm:$0xff]  }
  0x68   :  { %1476 = vmatpush1.bf16.msra.mxu0 %v3646_v30  ;;  %1640 = vmatpush1.bf16.msra.mxu1 %v3647_v31  ;;  %v3729_v27 = vld [vmem:[#allocation5 + $0x2a8] ss:$16 sps:$4 sm:$0xff]   ;;  %v3734_v28 = vld [vmem:[#allocation5 + $0x2c4] ss:$16 sps:$4 sm:$0xff]   ;;  %v3737_v29 = vld [vmem:[#allocation5 + $0x2cc] ss:$16 sps:$4 sm:$0xff]  }
  0x69   :  { %1477 = vmatprep.subr.bf16.mxu0 %v3648_v32  ;;  %1641 = vmatprep.subr.bf16.mxu1 %v3650_v33  ;;  %v84_v30 = vld [vmem:[#allocation2 + $0x18] sm:$0xff]  ;;  %v3735_v33 = vld [vmem:[#allocation5 + $0x2c8] ss:$16 sps:$4 sm:$0xff]   ;;  %s4248_s8 = scalar_lea.vmem %s3111_s30, 64 }
  0x6a   :  { %v3732_v31 = vld [vmem:[#allocation5 + $0x2c0] ss:$16 sps:$4 sm:$0xff]   ;;  %v91_v32 = vpack.c.bf16 %v84_v30, %v84_v30  ;;  %v3758_v46 = vld [vmem:[#allocation5 + $0x344] ss:$16 sps:$4 sm:$0xff]   ;;  %p4249_p4 = scmp.ne.s32.totalorder %s3111_s30, %s4248_s8  ;;  %p4254_p6 = scmp.lt.s32.totalorder %s4248_s8, %s4248_s8 }
  0x6b   :  { %v3756_v48 = vld [vmem:[#allocation5 + $0x340] ss:$16 sps:$4 sm:$0xff]   ;;  %v3788_v2 = vld [vmem:[#allocation5 + $0x3e4] ss:$16 sps:$4 sm:$0xff]  }
  0x6c   :  { %1478 = vmatpush1.bf16.msra.mxu0 %v3652_v34  ;;  %1642 = vmatpush1.bf16.msra.mxu1 %v3653_v35  ;;  %v3740_v34 = vld [vmem:[#allocation5 + $0x2e4] ss:$16 sps:$4 sm:$0xff]   ;;  %v3743_v35 = vld [vmem:[#allocation5 + $0x2ec] ss:$16 sps:$4 sm:$0xff]   ;;  %p4255_p7 = por %p4254_p6, %p4253_p5 }
  0x6d   :  { %1479 = vmatprep.subr.bf16.mxu0 %v3654_v36  ;;  %1643 = vmatprep.subr.bf16.mxu1 %v3656_v37  ;;  %v3738_v36 = vld [vmem:[#allocation5 + $0x2e0] ss:$16 sps:$4 sm:$0xff]   ;;  %v3741_v37 = vld [vmem:[#allocation5 + $0x2e8] ss:$16 sps:$4 sm:$0xff]   ;;  %v3824_v30 = vld [vmem:[#allocation5 + $0x4a4] ss:$16 sps:$4 sm:$0xff]  }
  0x6e   :  { %p4256_p8 = pnand %p4255_p7, %p4249_p4 }
  0x70   :  { %1480 = vmatpush1.bf16.msra.mxu0 %v3658_v38  ;;  %1644 = vmatpush1.bf16.msra.mxu1 %v3659_v39  ;;  %v3746_v38 = vld [vmem:[#allocation5 + $0x304] ss:$16 sps:$4 sm:$0xff]   ;;  %v3749_v39 = vld [vmem:[#allocation5 + $0x30c] ss:$16 sps:$4 sm:$0xff]  }
  0x71   :  { %1481 = vmatprep.subr.bf16.mxu0 %v3660_v40  ;;  %1645 = vmatprep.subr.bf16.mxu1 %v3662_v41  ;;  %v3744_v40 = vld [vmem:[#allocation5 + $0x300] ss:$16 sps:$4 sm:$0xff]   ;;  %v3747_v41 = vld [vmem:[#allocation5 + $0x308] ss:$16 sps:$4 sm:$0xff]  }
  0x74   :  { %1482 = vmatpush1.bf16.msra.mxu0 %v3664_v42  ;;  %1646 = vmatpush1.bf16.msra.mxu1 %v3665_v43  ;;  %v3752_v42 = vld [vmem:[#allocation5 + $0x324] ss:$16 sps:$4 sm:$0xff]   ;;  %v3755_v43 = vld [vmem:[#allocation5 + $0x32c] ss:$16 sps:$4 sm:$0xff]  }
  0x75   :  { %1483 = vmatprep.subr.bf16.mxu0 %v3666_v44  ;;  %1647 = vmatprep.subr.bf16.mxu1 %v3668_v45  ;;  %v3750_v44 = vld [vmem:[#allocation5 + $0x320] ss:$16 sps:$4 sm:$0xff]   ;;  %v3753_v45 = vld [vmem:[#allocation5 + $0x328] ss:$16 sps:$4 sm:$0xff]  }
  0x78   :  { %1484 = vmatpush1.bf16.msra.mxu0 %v3670_v47  ;;  %1648 = vmatpush1.bf16.msra.mxu1 %v3671_v49  ;;  %v3761_v47 = vld [vmem:[#allocation5 + $0x34c] ss:$16 sps:$4 sm:$0xff]   ;;  %v3759_v49 = vld [vmem:[#allocation5 + $0x348] ss:$16 sps:$4 sm:$0xff]  }
  0x79   :  { %1485 = vmatprep.subr.bf16.mxu0 %v3672_v50  ;;  %1649 = vmatprep.subr.bf16.mxu1 %v3674_v51  ;;  %v3764_v50 = vld [vmem:[#allocation5 + $0x364] ss:$16 sps:$4 sm:$0xff]   ;;  %v3767_v51 = vld [vmem:[#allocation5 + $0x36c] ss:$16 sps:$4 sm:$0xff]  }
  0x7c   :  { %1486 = vmatpush1.bf16.msra.mxu0 %v3676_v52  ;;  %1650 = vmatpush1.bf16.msra.mxu1 %v3677_v53  ;;  %v3762_v52 = vld [vmem:[#allocation5 + $0x360] ss:$16 sps:$4 sm:$0xff]   ;;  %v3765_v53 = vld [vmem:[#allocation5 + $0x368] ss:$16 sps:$4 sm:$0xff]  }
  0x7d   :  { %1487 = vmatprep.subr.bf16.mxu0 %v3678_v54  ;;  %1651 = vmatprep.subr.bf16.mxu1 %v3680_v55  ;;  %v3770_v54 = vld [vmem:[#allocation5 + $0x384] ss:$16 sps:$4 sm:$0xff]   ;;  %v3773_v55 = vld [vmem:[#allocation5 + $0x38c] ss:$16 sps:$4 sm:$0xff]  }
  0x80   :  { %1488 = vmatpush1.bf16.msra.mxu0 %v3682_v56  ;;  %1652 = vmatpush1.bf16.msra.mxu1 %v3683_v57  ;;  %v3768_v56 = vld [vmem:[#allocation5 + $0x380] ss:$16 sps:$4 sm:$0xff]   ;;  %v3771_v57 = vld [vmem:[#allocation5 + $0x388] ss:$16 sps:$4 sm:$0xff]  }
  0x81   :  { %1489 = vmatprep.subr.bf16.mxu0 %v3684_v58  ;;  %1653 = vmatprep.subr.bf16.mxu1 %v3686_v59  ;;  %v3776_v58 = vld [vmem:[#allocation5 + $0x3a4] ss:$16 sps:$4 sm:$0xff]   ;;  %v3779_v59 = vld [vmem:[#allocation5 + $0x3ac] ss:$16 sps:$4 sm:$0xff]  }
  0x84   :  { %1490 = vmatpush1.bf16.msra.mxu0 %v3688_v60  ;;  %1654 = vmatpush1.bf16.msra.mxu1 %v3689_v61  ;;  %v3774_v60 = vld [vmem:[#allocation5 + $0x3a0] ss:$16 sps:$4 sm:$0xff]   ;;  %v3777_v61 = vld [vmem:[#allocation5 + $0x3a8] ss:$16 sps:$4 sm:$0xff]  }
  0x85   :  { %1491 = vmatprep.subr.bf16.mxu0 %v3690_v62  ;;  %1655 = vmatprep.subr.bf16.mxu1 %v3692_v63  ;;  %v3782_v62 = vld [vmem:[#allocation5 + $0x3c4] ss:$16 sps:$4 sm:$0xff]   ;;  %v3785_v63 = vld [vmem:[#allocation5 + $0x3cc] ss:$16 sps:$4 sm:$0xff]  }
  0x88   :  { %1492 = vmatpush1.bf16.msra.mxu0 %v3694_v0  ;;  %1656 = vmatpush1.bf16.msra.mxu1 %v3695_v1  ;;  %v3780_v0 = vld [vmem:[#allocation5 + $0x3c0] ss:$16 sps:$4 sm:$0xff]   ;;  %v3783_v1 = vld [vmem:[#allocation5 + $0x3c8] ss:$16 sps:$4 sm:$0xff]  }
  0x89   :  { %1502 = vmatprep.subr.bf16.mxu0 %v3698_v3  ;;  %1666 = vmatprep.subr.bf16.mxu1 %v3701_v4  ;;  %v3791_v3 = vld [vmem:[#allocation5 + $0x3ec] ss:$16 sps:$4 sm:$0xff]   ;;  %v3786_v4 = vld [vmem:[#allocation5 + $0x3e0] ss:$16 sps:$4 sm:$0xff]  }
  0x8b   :  { %1494 = vmatmul.mubr.bf16.vlgmr.msra.gmra.mrb[0].mxu0 %v88_v5  ;;  %1658 = vmatmul.mubr.bf16.vlgmr.msra.gmra.mrb[0].mxu1 %v88_v5  ;;  %v3789_v5 = vld [vmem:[#allocation5 + $0x3e8] ss:$16 sps:$4 sm:$0xff]  }
  0x8c   :  { %1503 = vmatpush1.bf16.msra.mxu0 %v3696_v6  ;;  %1667 = vmatpush1.bf16.msra.mxu1 %v3699_v7  ;;  %v3794_v6 = vld [vmem:[#allocation5 + $0x404] ss:$16 sps:$4 sm:$0xff]   ;;  %v83_v7 = vld [vmem:[#allocation2 + $0x10] sm:$0xff] }
  0x8d   :  { %1504 = vmatprep.subr.bf16.mxu0 %v3704_v8  ;;  %1668 = vmatprep.subr.bf16.mxu1 %v3707_v9  ;;  %v3797_v8 = vld [vmem:[#allocation5 + $0x40c] ss:$16 sps:$4 sm:$0xff]   ;;  %v3792_v9 = vld [vmem:[#allocation5 + $0x400] ss:$16 sps:$4 sm:$0xff]  }
  0x8e   :  { %1534 = vmatprep.mubr.bf16.mxu0 %v91_v32  ;;  %1698 = vmatprep.mubr.bf16.mxu1 %v91_v32  ;;  %v3822_v32 = vld [vmem:[#allocation5 + $0x4a0] ss:$16 sps:$4 sm:$0xff]  }
  0x90   :  { %1505 = vmatpush1.bf16.msra.mxu0 %v3702_v10  ;;  %1669 = vmatpush1.bf16.msra.mxu1 %v3705_v11  ;;  %v3795_v10 = vld [vmem:[#allocation5 + $0x408] ss:$16 sps:$4 sm:$0xff]   ;;  %v90_v11 = vpack.c.bf16 %v83_v7, %v83_v7  ;;  %v3887_v7 = vld [vmem:[#allocation5 + $0x5ec] ss:$16 sps:$4 sm:$0xff]  }
  0x91   :  { %1506 = vmatprep.subr.bf16.mxu0 %v3710_v12  ;;  %1670 = vmatprep.subr.bf16.mxu1 %v3713_v13  ;;  %v3800_v12 = vld [vmem:[#allocation5 + $0x424] ss:$16 sps:$4 sm:$0xff]   ;;  %v3803_v13 = vld [vmem:[#allocation5 + $0x42c] ss:$16 sps:$4 sm:$0xff]  }
  0x94   :  { %1507 = vmatpush1.bf16.msra.mxu0 %v3708_v14  ;;  %1671 = vmatpush1.bf16.msra.mxu1 %v3711_v15  ;;  %v86_v14 = vld [vmem:[#allocation2 + $0x28] sm:$0xff] }
  0x95   :  { %1508 = vmatprep.subr.bf16.mxu0 %v3716_v16  ;;  %1672 = vmatprep.subr.bf16.mxu1 %v3719_v17  ;;  %v93_v15 = vpack.c.bf16 %v86_v14, %v86_v14  ;;  %v3798_v16 = vld [vmem:[#allocation5 + $0x420] ss:$16 sps:$4 sm:$0xff]   ;;  %v3801_v17 = vld [vmem:[#allocation5 + $0x428] ss:$16 sps:$4 sm:$0xff]  }
  0x96   :  { %v3891_v14 = vld [vmem:[#allocation5 + $0x608] ss:$16 sps:$4 sm:$0xff]  }
  0x98   :  { %1509 = vmatpush1.bf16.msra.mxu0 %v3714_v18  ;;  %1673 = vmatpush1.bf16.msra.mxu1 %v3717_v19  ;;  %v3806_v18 = vld [vmem:[#allocation5 + $0x444] ss:$16 sps:$4 sm:$0xff]   ;;  %v3809_v19 = vld [vmem:[#allocation5 + $0x44c] ss:$16 sps:$4 sm:$0xff]  }
  0x99   :  { %1510 = vmatprep.subr.bf16.mxu0 %v3722_v20  ;;  %1674 = vmatprep.subr.bf16.mxu1 %v3725_v21  ;;  %v3804_v20 = vld [vmem:[#allocation5 + $0x440] ss:$16 sps:$4 sm:$0xff]   ;;  %v3807_v21 = vld [vmem:[#allocation5 + $0x448] ss:$16 sps:$4 sm:$0xff]  }
  0x9c   :  { %1511 = vmatpush1.bf16.msra.mxu0 %v3720_v22  ;;  %1675 = vmatpush1.bf16.msra.mxu1 %v3723_v23  ;;  %v3812_v22 = vld [vmem:[#allocation5 + $0x464] ss:$16 sps:$4 sm:$0xff]   ;;  %v3815_v23 = vld [vmem:[#allocation5 + $0x46c] ss:$16 sps:$4 sm:$0xff]  }
  0x9d   :  { %1512 = vmatprep.subr.bf16.mxu0 %v3728_v24  ;;  %1676 = vmatprep.subr.bf16.mxu1 %v3731_v25  ;;  %v3810_v24 = vld [vmem:[#allocation5 + $0x460] ss:$16 sps:$4 sm:$0xff]   ;;  %v3813_v25 = vld [vmem:[#allocation5 + $0x468] ss:$16 sps:$4 sm:$0xff]  }
  0xa0   :  { %1513 = vmatpush1.bf16.msra.mxu0 %v3726_v26  ;;  %1677 = vmatpush1.bf16.msra.mxu1 %v3729_v27  ;;  %v3818_v26 = vld [vmem:[#allocation5 + $0x484] ss:$16 sps:$4 sm:$0xff]   ;;  %v3821_v27 = vld [vmem:[#allocation5 + $0x48c] ss:$16 sps:$4 sm:$0xff]  }
  0xa1   :  { %1514 = vmatprep.subr.bf16.mxu0 %v3734_v28  ;;  %1678 = vmatprep.subr.bf16.mxu1 %v3737_v29  ;;  %v3816_v28 = vld [vmem:[#allocation5 + $0x480] ss:$16 sps:$4 sm:$0xff]   ;;  %v3819_v29 = vld [vmem:[#allocation5 + $0x488] ss:$16 sps:$4 sm:$0xff]  }
  0xa4   :  { %1515 = vmatpush1.bf16.msra.mxu0 %v3732_v31  ;;  %1679 = vmatpush1.bf16.msra.mxu1 %v3735_v33  ;;  %v3827_v31 = vld [vmem:[#allocation5 + $0x4ac] ss:$16 sps:$4 sm:$0xff]   ;;  %v3825_v33 = vld [vmem:[#allocation5 + $0x4a8] ss:$16 sps:$4 sm:$0xff]  }
  0xa5   :  { %1516 = vmatprep.subr.bf16.mxu0 %v3740_v34  ;;  %1680 = vmatprep.subr.bf16.mxu1 %v3743_v35  ;;  %v3830_v34 = vld [vmem:[#allocation5 + $0x4c4] ss:$16 sps:$4 sm:$0xff]   ;;  %v3833_v35 = vld [vmem:[#allocation5 + $0x4cc] ss:$16 sps:$4 sm:$0xff]  }
  0xa8   :  { %1517 = vmatpush1.bf16.msra.mxu0 %v3738_v36  ;;  %1681 = vmatpush1.bf16.msra.mxu1 %v3741_v37  ;;  %v3828_v36 = vld [vmem:[#allocation5 + $0x4c0] ss:$16 sps:$4 sm:$0xff]   ;;  %v3831_v37 = vld [vmem:[#allocation5 + $0x4c8] ss:$16 sps:$4 sm:$0xff]  }
  0xa9   :  { %1518 = vmatprep.subr.bf16.mxu0 %v3746_v38  ;;  %1682 = vmatprep.subr.bf16.mxu1 %v3749_v39  ;;  %v3836_v38 = vld [vmem:[#allocation5 + $0x4e4] ss:$16 sps:$4 sm:$0xff]   ;;  %v3839_v39 = vld [vmem:[#allocation5 + $0x4ec] ss:$16 sps:$4 sm:$0xff]  }
  0xac   :  { %1519 = vmatpush1.bf16.msra.mxu0 %v3744_v40  ;;  %1683 = vmatpush1.bf16.msra.mxu1 %v3747_v41  ;;  %v3834_v40 = vld [vmem:[#allocation5 + $0x4e0] ss:$16 sps:$4 sm:$0xff]   ;;  %v3837_v41 = vld [vmem:[#allocation5 + $0x4e8] ss:$16 sps:$4 sm:$0xff]  }
  0xad   :  { %1520 = vmatprep.subr.bf16.mxu0 %v3752_v42  ;;  %1684 = vmatprep.subr.bf16.mxu1 %v3755_v43  ;;  %v3842_v42 = vld [vmem:[#allocation5 + $0x504] ss:$16 sps:$4 sm:$0xff]   ;;  %v3845_v43 = vld [vmem:[#allocation5 + $0x50c] ss:$16 sps:$4 sm:$0xff]  }
  0xb0   :  { %1521 = vmatpush1.bf16.msra.mxu0 %v3750_v44  ;;  %1685 = vmatpush1.bf16.msra.mxu1 %v3753_v45  ;;  %v3840_v44 = vld [vmem:[#allocation5 + $0x500] ss:$16 sps:$4 sm:$0xff]   ;;  %v3843_v45 = vld [vmem:[#allocation5 + $0x508] ss:$16 sps:$4 sm:$0xff]  }
  0xb1   :  { %1522 = vmatprep.subr.bf16.mxu0 %v3758_v46  ;;  %1686 = vmatprep.subr.bf16.mxu1 %v3761_v47  ;;  %v3848_v46 = vld [vmem:[#allocation5 + $0x524] ss:$16 sps:$4 sm:$0xff]   ;;  %v3851_v47 = vld [vmem:[#allocation5 + $0x52c] ss:$16 sps:$4 sm:$0xff]  }
  0xb4   :  { %1523 = vmatpush1.bf16.msra.mxu0 %v3756_v48  ;;  %1687 = vmatpush1.bf16.msra.mxu1 %v3759_v49  ;;  %v3846_v48 = vld [vmem:[#allocation5 + $0x520] ss:$16 sps:$4 sm:$0xff]   ;;  %v3849_v49 = vld [vmem:[#allocation5 + $0x528] ss:$16 sps:$4 sm:$0xff]  }
  0xb5   :  { %1524 = vmatprep.subr.bf16.mxu0 %v3764_v50  ;;  %1688 = vmatprep.subr.bf16.mxu1 %v3767_v51  ;;  %v3854_v50 = vld [vmem:[#allocation5 + $0x544] ss:$16 sps:$4 sm:$0xff]   ;;  %v3857_v51 = vld [vmem:[#allocation5 + $0x54c] ss:$16 sps:$4 sm:$0xff]  }
  0xb8   :  { %1525 = vmatpush1.bf16.msra.mxu0 %v3762_v52  ;;  %1689 = vmatpush1.bf16.msra.mxu1 %v3765_v53  ;;  %v3852_v52 = vld [vmem:[#allocation5 + $0x540] ss:$16 sps:$4 sm:$0xff]   ;;  %v3855_v53 = vld [vmem:[#allocation5 + $0x548] ss:$16 sps:$4 sm:$0xff]  }
  0xb9   :  { %1526 = vmatprep.subr.bf16.mxu0 %v3770_v54  ;;  %1690 = vmatprep.subr.bf16.mxu1 %v3773_v55  ;;  %v3860_v54 = vld [vmem:[#allocation5 + $0x564] ss:$16 sps:$4 sm:$0xff]   ;;  %v3863_v55 = vld [vmem:[#allocation5 + $0x56c] ss:$16 sps:$4 sm:$0xff]  }
  0xbc   :  { %1527 = vmatpush1.bf16.msra.mxu0 %v3768_v56  ;;  %1691 = vmatpush1.bf16.msra.mxu1 %v3771_v57  ;;  %v3858_v56 = vld [vmem:[#allocation5 + $0x560] ss:$16 sps:$4 sm:$0xff]   ;;  %v3861_v57 = vld [vmem:[#allocation5 + $0x568] ss:$16 sps:$4 sm:$0xff]  }
  0xbd   :  { %1528 = vmatprep.subr.bf16.mxu0 %v3776_v58  ;;  %1692 = vmatprep.subr.bf16.mxu1 %v3779_v59  ;;  %v3866_v58 = vld [vmem:[#allocation5 + $0x584] ss:$16 sps:$4 sm:$0xff]   ;;  %v3869_v59 = vld [vmem:[#allocation5 + $0x58c] ss:$16 sps:$4 sm:$0xff]  }
  0xc0   :  { %1529 = vmatpush1.bf16.msra.mxu0 %v3774_v60  ;;  %1693 = vmatpush1.bf16.msra.mxu1 %v3777_v61  ;;  %v3864_v60 = vld [vmem:[#allocation5 + $0x580] ss:$16 sps:$4 sm:$0xff]   ;;  %v3867_v61 = vld [vmem:[#allocation5 + $0x588] ss:$16 sps:$4 sm:$0xff]  }
  0xc1   :  { %1530 = vmatprep.subr.bf16.mxu0 %v3782_v62  ;;  %1694 = vmatprep.subr.bf16.mxu1 %v3785_v63  ;;  %v3872_v62 = vld [vmem:[#allocation5 + $0x5a4] ss:$16 sps:$4 sm:$0xff]   ;;  %v3875_v63 = vld [vmem:[#allocation5 + $0x5ac] ss:$16 sps:$4 sm:$0xff]  }
  0xc4   :  { %1531 = vmatpush1.bf16.msra.mxu0 %v3780_v0  ;;  %1695 = vmatpush1.bf16.msra.mxu1 %v3783_v1  ;;  %v3870_v0 = vld [vmem:[#allocation5 + $0x5a0] ss:$16 sps:$4 sm:$0xff]   ;;  %v3873_v1 = vld [vmem:[#allocation5 + $0x5a8] ss:$16 sps:$4 sm:$0xff]  }
  0xc5   :  { %1532 = vmatprep.subr.bf16.mxu0 %v3788_v2  ;;  %1696 = vmatprep.subr.bf16.mxu1 %v3791_v3  ;;  %v3878_v2 = vld [vmem:[#allocation5 + $0x5c4] ss:$16 sps:$4 sm:$0xff]   ;;  %v3881_v3 = vld [vmem:[#allocation5 + $0x5cc] ss:$16 sps:$4 sm:$0xff]  }
  0xc8   :  { %1533 = vmatpush1.bf16.msra.mxu0 %v3786_v4  ;;  %1697 = vmatpush1.bf16.msra.mxu1 %v3789_v5  ;;  %v3876_v4 = vld [vmem:[#allocation5 + $0x5c0] ss:$16 sps:$4 sm:$0xff]   ;;  %v3879_v5 = vld [vmem:[#allocation5 + $0x5c8] ss:$16 sps:$4 sm:$0xff]  }
  0xc9   :  { %1543 = vmatprep.subr.bf16.mxu0 %v3794_v6  ;;  %1707 = vmatprep.subr.bf16.mxu1 %v3797_v8  ;;  %v3884_v6 = vld [vmem:[#allocation5 + $0x5e4] ss:$16 sps:$4 sm:$0xff]   ;;  %v3882_v8 = vld [vmem:[#allocation5 + $0x5e0] ss:$16 sps:$4 sm:$0xff]  }
  0xcb   :  { %1535 = vmatmul.mubr.bf16.vlgmr.msra.gmra.mrb[0].mxu0 %v90_v11  ;;  %1699 = vmatmul.mubr.bf16.vlgmr.msra.gmra.mrb[0].mxu1 %v90_v11  ;;  %v85_v11 = vld [vmem:[#allocation2 + $0x20] sm:$0xff] }
  0xcc   :  { %1544 = vmatpush1.bf16.msra.mxu0 %v3792_v9  ;;  %1708 = vmatpush1.bf16.msra.mxu1 %v3795_v10  ;;  %v3885_v9 = vld [vmem:[#allocation5 + $0x5e8] ss:$16 sps:$4 sm:$0xff]   ;;  %v3890_v10 = vld [vmem:[#allocation5 + $0x604] ss:$16 sps:$4 sm:$0xff]  }
  0xcd   :  { %1545 = vmatprep.subr.bf16.mxu0 %v3800_v12  ;;  %1709 = vmatprep.subr.bf16.mxu1 %v3803_v13  ;;  %v3893_v12 = vld [vmem:[#allocation5 + $0x60c] ss:$16 sps:$4 sm:$0xff]   ;;  %v3888_v13 = vld [vmem:[#allocation5 + $0x600] ss:$16 sps:$4 sm:$0xff]  }
  0xce   :  { %1575 = vmatprep.mubr.bf16.mxu0 %v93_v15  ;;  %1739 = vmatprep.mubr.bf16.mxu1 %v93_v15  ;;  %v92_v15 = vpack.c.bf16 %v85_v11, %v85_v11  ;;  %v3980_v11 = vld [vmem:[#allocation7 + $0xe4] ss:$16 sps:$4 sm:$0xff]  }
  0xd0   :  { %1546 = vmatpush1.bf16.msra.mxu0 %v3798_v16  ;;  %1710 = vmatpush1.bf16.msra.mxu1 %v3801_v17  ;;  %v3896_v16 = vld [vmem:[#allocation5 + $0x624] ss:$16 sps:$4 sm:$0xff]   ;;  %v3899_v17 = vld [vmem:[#allocation5 + $0x62c] ss:$16 sps:$4 sm:$0xff]  }
  0xd1   :  { %1547 = vmatprep.subr.bf16.mxu0 %v3806_v18  ;;  %1711 = vmatprep.subr.bf16.mxu1 %v3809_v19  ;;  %v3894_v18 = vld [vmem:[#allocation5 + $0x620] ss:$16 sps:$4 sm:$0xff]   ;;  %v3897_v19 = vld [vmem:[#allocation5 + $0x628] ss:$16 sps:$4 sm:$0xff]  }
  0xd4   :  { %1548 = vmatpush1.bf16.msra.mxu0 %v3804_v20  ;;  %1712 = vmatpush1.bf16.msra.mxu1 %v3807_v21  ;;  %v3902_v20 = vld [vmem:[#allocation5 + $0x644] ss:$16 sps:$4 sm:$0xff]   ;;  %v3905_v21 = vld [vmem:[#allocation5 + $0x64c] ss:$16 sps:$4 sm:$0xff]  }
  0xd5   :  { %1549 = vmatprep.subr.bf16.mxu0 %v3812_v22  ;;  %1713 = vmatprep.subr.bf16.mxu1 %v3815_v23  ;;  %v3900_v22 = vld [vmem:[#allocation5 + $0x640] ss:$16 sps:$4 sm:$0xff]   ;;  %v3903_v23 = vld [vmem:[#allocation5 + $0x648] ss:$16 sps:$4 sm:$0xff]  }
  0xd8   :  { %1550 = vmatpush1.bf16.msra.mxu0 %v3810_v24  ;;  %1714 = vmatpush1.bf16.msra.mxu1 %v3813_v25  ;;  %v4286_v24 = vmov 0   ;;  %v3908_v25 = vld [vmem:[#allocation5 + $0x664] ss:$16 sps:$4 sm:$0xff]  }
  0xd9   :  { %1551 = vmatprep.subr.bf16.mxu0 %v3818_v26  ;;  %1715 = vmatprep.subr.bf16.mxu1 %v3821_v27  ;;  %v3911_v26 = vld [vmem:[#allocation5 + $0x66c] ss:$16 sps:$4 sm:$0xff]   ;;  %v3906_v27 = vld [vmem:[#allocation5 + $0x660] ss:$16 sps:$4 sm:$0xff]  }
  0xdc   :  { %1552 = vmatpush1.bf16.msra.mxu0 %v3816_v28  ;;  %1716 = vmatpush1.bf16.msra.mxu1 %v3819_v29  ;;  %v3909_v28 = vld [vmem:[#allocation5 + $0x668] ss:$16 sps:$4 sm:$0xff]   ;;  %v3914_v29 = vld [vmem:[#allocation5 + $0x684] ss:$16 sps:$4 sm:$0xff]  }
  0xdd   :  { %1553 = vmatprep.subr.bf16.mxu0 %v3824_v30  ;;  %1717 = vmatprep.subr.bf16.mxu1 %v3827_v31  ;;  %v3917_v30 = vld [vmem:[#allocation5 + $0x68c] ss:$16 sps:$4 sm:$0xff]   ;;  %v3912_v31 = vld [vmem:[#allocation5 + $0x680] ss:$16 sps:$4 sm:$0xff]  }
  0xe0   :  { %1554 = vmatpush1.bf16.msra.mxu0 %v3822_v32  ;;  %1718 = vmatpush1.bf16.msra.mxu1 %v3825_v33  ;;  %v3915_v32 = vld [vmem:[#allocation5 + $0x688] ss:$16 sps:$4 sm:$0xff]   ;;  %v3920_v33 = vld [vmem:[#allocation5 + $0x6a4] ss:$16 sps:$4 sm:$0xff]  }
  0xe1   :  { %1555 = vmatprep.subr.bf16.mxu0 %v3830_v34  ;;  %1719 = vmatprep.subr.bf16.mxu1 %v3833_v35  ;;  %v3923_v34 = vld [vmem:[#allocation5 + $0x6ac] ss:$16 sps:$4 sm:$0xff]   ;;  %v3918_v35 = vld [vmem:[#allocation5 + $0x6a0] ss:$16 sps:$4 sm:$0xff]  }
  0xe4   :  { %1556 = vmatpush1.bf16.msra.mxu0 %v3828_v36  ;;  %1720 = vmatpush1.bf16.msra.mxu1 %v3831_v37  ;;  %v3921_v36 = vld [vmem:[#allocation5 + $0x6a8] ss:$16 sps:$4 sm:$0xff]   ;;  %v3926_v37 = vld [vmem:[#allocation5 + $0x6c4] ss:$16 sps:$4 sm:$0xff]  }
  0xe5   :  { %1557 = vmatprep.subr.bf16.mxu0 %v3836_v38  ;;  %1721 = vmatprep.subr.bf16.mxu1 %v3839_v39  ;;  %v3929_v38 = vld [vmem:[#allocation5 + $0x6cc] ss:$16 sps:$4 sm:$0xff]   ;;  %v3924_v39 = vld [vmem:[#allocation5 + $0x6c0] ss:$16 sps:$4 sm:$0xff]  }
  0xe8   :  { %1558 = vmatpush1.bf16.msra.mxu0 %v3834_v40  ;;  %1722 = vmatpush1.bf16.msra.mxu1 %v3837_v41  ;;  %v3927_v40 = vld [vmem:[#allocation5 + $0x6c8] ss:$16 sps:$4 sm:$0xff]   ;;  %v3932_v41 = vld [vmem:[#allocation5 + $0x6e4] ss:$16 sps:$4 sm:$0xff]  }
  0xe9   :  { %1559 = vmatprep.subr.bf16.mxu0 %v3842_v42  ;;  %1723 = vmatprep.subr.bf16.mxu1 %v3845_v43  ;;  %v3935_v42 = vld [vmem:[#allocation5 + $0x6ec] ss:$16 sps:$4 sm:$0xff]   ;;  %v3930_v43 = vld [vmem:[#allocation5 + $0x6e0] ss:$16 sps:$4 sm:$0xff]  }
  0xec   :  { %1560 = vmatpush1.bf16.msra.mxu0 %v3840_v44  ;;  %1724 = vmatpush1.bf16.msra.mxu1 %v3843_v45  ;;  %v3933_v44 = vld [vmem:[#allocation5 + $0x6e8] ss:$16 sps:$4 sm:$0xff]  }
  0xed   :  { %1561 = vmatprep.subr.bf16.mxu0 %v3848_v46  ;;  %1725 = vmatprep.subr.bf16.mxu1 %v3851_v47  ;;  %v87_v45 = vld [vmem:[#allocation2 + $0x30] sm:$0xff]  ;;  %v3938_v46 = vld [vmem:[#allocation7 + $0x4] ss:$16 sps:$4 sm:$0xff]  }
  0xee   :  { %v3941_v47 = vld [vmem:[#allocation7 + $0xc] ss:$16 sps:$4 sm:$0xff]  }
  0xf0   :  { %1562 = vmatpush1.bf16.msra.mxu0 %v3846_v48  ;;  %1726 = vmatpush1.bf16.msra.mxu1 %v3849_v49  ;;  %v3936_v48 = vld [vmem:[#allocation7] ss:$16 sps:$4 sm:$0xff]   ;;  %v3939_v49 = vld [vmem:[#allocation7 + $0x8] ss:$16 sps:$4 sm:$0xff]  }
  0xf1   :  { %1563 = vmatprep.subr.bf16.mxu0 %v3854_v50  ;;  %1727 = vmatprep.subr.bf16.mxu1 %v3857_v51  ;;  %v94_v50 = vpack.c.bf16 %v87_v45, %v87_v45  ;;  %v3944_v51 = vld [vmem:[#allocation7 + $0x24] ss:$16 sps:$4 sm:$0xff]   ;;  %v4026_v45 = vld [vmem:[#allocation7 + $0x1e0] ss:$16 sps:$4 sm:$0xff]  }
  0xf4   :  { %1564 = vmatpush1.bf16.msra.mxu0 %v3852_v52  ;;  %1728 = vmatpush1.bf16.msra.mxu1 %v3855_v53  ;;  %v3947_v52 = vld [vmem:[#allocation7 + $0x2c] ss:$16 sps:$4 sm:$0xff]   ;;  %v3942_v53 = vld [vmem:[#allocation7 + $0x20] ss:$16 sps:$4 sm:$0xff]  }
  0xf5   :  { %1565 = vmatprep.subr.bf16.mxu0 %v3860_v54  ;;  %1729 = vmatprep.subr.bf16.mxu1 %v3863_v55  ;;  %v3945_v54 = vld [vmem:[#allocation7 + $0x28] ss:$16 sps:$4 sm:$0xff]   ;;  %v3950_v55 = vld [vmem:[#allocation7 + $0x44] ss:$16 sps:$4 sm:$0xff]  }
  0xf8   :  { %1566 = vmatpush1.bf16.msra.mxu0 %v3858_v56  ;;  %1730 = vmatpush1.bf16.msra.mxu1 %v3861_v57  ;;  %v3953_v56 = vld [vmem:[#allocation7 + $0x4c] ss:$16 sps:$4 sm:$0xff]   ;;  %v3948_v57 = vld [vmem:[#allocation7 + $0x40] ss:$16 sps:$4 sm:$0xff]  }
  0xf9   :  { %1567 = vmatprep.subr.bf16.mxu0 %v3866_v58  ;;  %1731 = vmatprep.subr.bf16.mxu1 %v3869_v59  ;;  %v3951_v58 = vld [vmem:[#allocation7 + $0x48] ss:$16 sps:$4 sm:$0xff]   ;;  %v3956_v59 = vld [vmem:[#allocation7 + $0x64] ss:$16 sps:$4 sm:$0xff]  }
  0xfc   :  { %1568 = vmatpush1.bf16.msra.mxu0 %v3864_v60  ;;  %1732 = vmatpush1.bf16.msra.mxu1 %v3867_v61  ;;  %v3959_v60 = vld [vmem:[#allocation7 + $0x6c] ss:$16 sps:$4 sm:$0xff]   ;;  %v3954_v61 = vld [vmem:[#allocation7 + $0x60] ss:$16 sps:$4 sm:$0xff]  }
  0xfd   :  { %1569 = vmatprep.subr.bf16.mxu0 %v3872_v62  ;;  %1733 = vmatprep.subr.bf16.mxu1 %v3875_v63  ;;  %v3957_v62 = vld [vmem:[#allocation7 + $0x68] ss:$16 sps:$4 sm:$0xff]   ;;  %v3962_v63 = vld [vmem:[#allocation7 + $0x84] ss:$16 sps:$4 sm:$0xff]  }
 0x100   :  { %1570 = vmatpush1.bf16.msra.mxu0 %v3870_v0  ;;  %1734 = vmatpush1.bf16.msra.mxu1 %v3873_v1  ;;  %v3965_v0 = vld [vmem:[#allocation7 + $0x8c] ss:$16 sps:$4 sm:$0xff]   ;;  %v3960_v1 = vld [vmem:[#allocation7 + $0x80] ss:$16 sps:$4 sm:$0xff]  }
 0x101   :  { %1571 = vmatprep.subr.bf16.mxu0 %v3878_v2  ;;  %1735 = vmatprep.subr.bf16.mxu1 %v3881_v3  ;;  %v3963_v2 = vld [vmem:[#allocation7 + $0x88] ss:$16 sps:$4 sm:$0xff]   ;;  %v3968_v3 = vld [vmem:[#allocation7 + $0xa4] ss:$16 sps:$4 sm:$0xff]  }
 0x104   :  { %1572 = vmatpush1.bf16.msra.mxu0 %v3876_v4  ;;  %1736 = vmatpush1.bf16.msra.mxu1 %v3879_v5  ;;  %v3971_v4 = vld [vmem:[#allocation7 + $0xac] ss:$16 sps:$4 sm:$0xff]   ;;  %v3966_v5 = vld [vmem:[#allocation7 + $0xa0] ss:$16 sps:$4 sm:$0xff]  }
 0x105   :  { %1573 = vmatprep.subr.bf16.mxu0 %v3884_v6  ;;  %1737 = vmatprep.subr.bf16.mxu1 %v3887_v7  ;;  %v3969_v6 = vld [vmem:[#allocation7 + $0xa8] ss:$16 sps:$4 sm:$0xff]   ;;  %v3974_v7 = vld [vmem:[#allocation7 + $0xc4] ss:$16 sps:$4 sm:$0xff]  }
 0x108   :  { %1574 = vmatpush1.bf16.msra.mxu0 %v3882_v8  ;;  %1738 = vmatpush1.bf16.msra.mxu1 %v3885_v9  ;;  %v3977_v8 = vld [vmem:[#allocation7 + $0xcc] ss:$16 sps:$4 sm:$0xff]   ;;  %v3972_v9 = vld [vmem:[#allocation7 + $0xc0] ss:$16 sps:$4 sm:$0xff]  }
 0x109   :  { %1584 = vmatprep.subr.bf16.mxu0 %v3890_v10  ;;  %1748 = vmatprep.subr.bf16.mxu1 %v3893_v12  ;;  %v3975_v10 = vld [vmem:[#allocation7 + $0xc8] ss:$16 sps:$4 sm:$0xff]   ;;  %v3983_v12 = vld [vmem:[#allocation7 + $0xec] ss:$16 sps:$4 sm:$0xff]  }
 0x10b   :  { %1576 = vmatmul.mubr.bf16.vlgmr.msra.gmra.mrb[0].mxu0 %v92_v15  ;;  %1740 = vmatmul.mubr.bf16.vlgmr.msra.gmra.mrb[0].mxu1 %v92_v15  ;;  %v3986_v15 = vld [vmem:[#allocation7 + $0x104] ss:$16 sps:$4 sm:$0xff]  }
 0x10c   :  { %1585 = vmatpush1.bf16.msra.mxu0 %v3888_v13  ;;  %1749 = vmatpush1.bf16.msra.mxu1 %v3891_v14  ;;  %v3978_v13 = vld [vmem:[#allocation7 + $0xe0] ss:$16 sps:$4 sm:$0xff]   ;;  %v3981_v14 = vld [vmem:[#allocation7 + $0xe8] ss:$16 sps:$4 sm:$0xff]  }
 0x10d   :  { %1586 = vmatprep.subr.bf16.mxu0 %v3896_v16  ;;  %1750 = vmatprep.subr.bf16.mxu1 %v3899_v17  ;;  %v3989_v16 = vld [vmem:[#allocation7 + $0x10c] ss:$16 sps:$4 sm:$0xff]   ;;  %v3984_v17 = vld [vmem:[#allocation7 + $0x100] ss:$16 sps:$4 sm:$0xff]  }
 0x10e   :  { %1616 = vmatprep.mubr.bf16.mxu0 %v4286_v24  ;;  %1780 = vmatprep.mubr.bf16.mxu1 %v4286_v24  ;;  %v4001_v24 = vld [vmem:[#allocation7 + $0x14c] ss:$16 sps:$4 sm:$0xff]  }
 0x110   :  { %1587 = vmatpush1.bf16.msra.mxu0 %v3894_v18  ;;  %1751 = vmatpush1.bf16.msra.mxu1 %v3897_v19  ;;  %v3987_v18 = vld [vmem:[#allocation7 + $0x108] ss:$16 sps:$4 sm:$0xff]   ;;  %v3992_v19 = vld [vmem:[#allocation7 + $0x124] ss:$16 sps:$4 sm:$0xff]  }
 0x111   :  { %1588 = vmatprep.subr.bf16.mxu0 %v3902_v20  ;;  %1752 = vmatprep.subr.bf16.mxu1 %v3905_v21  ;;  %v3995_v20 = vld [vmem:[#allocation7 + $0x12c] ss:$16 sps:$4 sm:$0xff]   ;;  %v3990_v21 = vld [vmem:[#allocation7 + $0x120] ss:$16 sps:$4 sm:$0xff]  }
 0x114   :  { %1589 = vmatpush1.bf16.msra.mxu0 %v3900_v22  ;;  %1753 = vmatpush1.bf16.msra.mxu1 %v3903_v23  ;;  %v3993_v22 = vld [vmem:[#allocation7 + $0x128] ss:$16 sps:$4 sm:$0xff]   ;;  %v3998_v23 = vld [vmem:[#allocation7 + $0x144] ss:$16 sps:$4 sm:$0xff]  }
 0x115   :  { %1590 = vmatprep.subr.bf16.mxu0 %v3908_v25  ;;  %1754 = vmatprep.subr.bf16.mxu1 %v3911_v26  ;;  %v3996_v25 = vld [vmem:[#allocation7 + $0x140] ss:$16 sps:$4 sm:$0xff]   ;;  %v3999_v26 = vld [vmem:[#allocation7 + $0x148] ss:$16 sps:$4 sm:$0xff]  }
 0x118   :  { %1591 = vmatpush1.bf16.msra.mxu0 %v3906_v27  ;;  %1755 = vmatpush1.bf16.msra.mxu1 %v3909_v28  ;;  %v4004_v27 = vld [vmem:[#allocation7 + $0x164] ss:$16 sps:$4 sm:$0xff]   ;;  %v4007_v28 = vld [vmem:[#allocation7 + $0x16c] ss:$16 sps:$4 sm:$0xff]  }
 0x119   :  { %1592 = vmatprep.subr.bf16.mxu0 %v3914_v29  ;;  %1756 = vmatprep.subr.bf16.mxu1 %v3917_v30  ;;  %v4002_v29 = vld [vmem:[#allocation7 + $0x160] ss:$16 sps:$4 sm:$0xff]   ;;  %v4005_v30 = vld [vmem:[#allocation7 + $0x168] ss:$16 sps:$4 sm:$0xff]  }
 0x11c   :  { %1593 = vmatpush1.bf16.msra.mxu0 %v3912_v31  ;;  %1757 = vmatpush1.bf16.msra.mxu1 %v3915_v32  ;;  %v4010_v31 = vld [vmem:[#allocation7 + $0x184] ss:$16 sps:$4 sm:$0xff]   ;;  %v4013_v32 = vld [vmem:[#allocation7 + $0x18c] ss:$16 sps:$4 sm:$0xff]  }
 0x11d   :  { %1594 = vmatprep.subr.bf16.mxu0 %v3920_v33  ;;  %1758 = vmatprep.subr.bf16.mxu1 %v3923_v34  ;;  %v4008_v33 = vld [vmem:[#allocation7 + $0x180] ss:$16 sps:$4 sm:$0xff]   ;;  %v4011_v34 = vld [vmem:[#allocation7 + $0x188] ss:$16 sps:$4 sm:$0xff]  }
 0x120   :  { %1595 = vmatpush1.bf16.msra.mxu0 %v3918_v35  ;;  %1759 = vmatpush1.bf16.msra.mxu1 %v3921_v36  ;;  %v4016_v35 = vld [vmem:[#allocation7 + $0x1a4] ss:$16 sps:$4 sm:$0xff]   ;;  %v4019_v36 = vld [vmem:[#allocation7 + $0x1ac] ss:$16 sps:$4 sm:$0xff]  }
 0x121   :  { %1596 = vmatprep.subr.bf16.mxu0 %v3926_v37  ;;  %1760 = vmatprep.subr.bf16.mxu1 %v3929_v38  ;;  %v4014_v37 = vld [vmem:[#allocation7 + $0x1a0] ss:$16 sps:$4 sm:$0xff]   ;;  %v4017_v38 = vld [vmem:[#allocation7 + $0x1a8] ss:$16 sps:$4 sm:$0xff]  }
 0x124   :  { %1597 = vmatpush1.bf16.msra.mxu0 %v3924_v39  ;;  %1761 = vmatpush1.bf16.msra.mxu1 %v3927_v40  ;;  %v4022_v39 = vld [vmem:[#allocation7 + $0x1c4] ss:$16 sps:$4 sm:$0xff]   ;;  %v4025_v40 = vld [vmem:[#allocation7 + $0x1cc] ss:$16 sps:$4 sm:$0xff]  }
 0x125   :  { %1598 = vmatprep.subr.bf16.mxu0 %v3932_v41  ;;  %1762 = vmatprep.subr.bf16.mxu1 %v3935_v42  ;;  %v4020_v41 = vld [vmem:[#allocation7 + $0x1c0] ss:$16 sps:$4 sm:$0xff]   ;;  %v4023_v42 = vld [vmem:[#allocation7 + $0x1c8] ss:$16 sps:$4 sm:$0xff]  }
 0x128   :  { %1599 = vmatpush1.bf16.msra.mxu0 %v3930_v43  ;;  %1763 = vmatpush1.bf16.msra.mxu1 %v3933_v44  ;;  %v4028_v43 = vld [vmem:[#allocation7 + $0x1e4] ss:$16 sps:$4 sm:$0xff]   ;;  %v4031_v44 = vld [vmem:[#allocation7 + $0x1ec] ss:$16 sps:$4 sm:$0xff]  }
 0x129   :  { %2587 = vmatprep.subr.bf16.mxu0 %v3938_v46  ;;  %2669 = vmatprep.subr.bf16.mxu1 %v3941_v47  ;;  %v4029_v46 = vld [vmem:[#allocation7 + $0x1e8] ss:$16 sps:$4 sm:$0xff]   ;;  %v4034_v47 = vld [vmem:[#allocation7 + $0x204] ss:$16 sps:$4 sm:$0xff]  }
 0x12b   :  { %1617 = vmatmul.mubr.bf16.vlgmr.msra.gmra.mrb[0].mxu0 %v94_v50  ;;  %1781 = vmatmul.mubr.bf16.vlgmr.msra.gmra.mrb[0].mxu1 %v94_v50 }
 0x12c   :  { %2588 = vmatpush1.bf16.msra.mxu0 %v3936_v48  ;;  %2670 = vmatpush1.bf16.msra.mxu1 %v3939_v49  ;;  %v4037_v48 = vld [vmem:[#allocation7 + $0x20c] ss:$16 sps:$4 sm:$0xff]   ;;  %v321_v49 = vlaneseq }
 0x12d   :  { %2589 = vmatprep.subr.bf16.mxu0 %v3944_v51  ;;  %2671 = vmatprep.subr.bf16.mxu1 %v3947_v52  ;;  %v4388_v52 = vld [vmem:[%s4436_s2] sm:$0xf] }
 0x12e   :  { %v4382_v50 = vshrl.u32 %v321_v49, 7  ;;  %v4094_v49 = vld [vmem:[#allocation7 + $0x344] ss:$16 sps:$4 sm:$0xff]  }
 0x130   :  { %2590 = vmatpush1.bf16.msra.mxu0 %v3942_v53  ;;  %2672 = vmatpush1.bf16.msra.mxu1 %v3945_v54  ;;  %v323_v51 = vsub.s32 0, %v4382_v50  ;;  %v327_v53 = vsub.s32 1, %v4382_v50  ;;  %v335_v54 = vsub.s32 3, %v4382_v50 }
 0x131   :  { %2591 = vmatprep.subr.bf16.mxu0 %v3950_v55  ;;  %2673 = vmatprep.subr.bf16.mxu1 %v3953_v56 }
 0x132   :  { %v324_v55 = vrot.slane %v4388_v52, %v323_v51  ;;  %v328_v56 = vrot.slane %v4388_v52, %v327_v53 }
 0x134   :  { %2592 = vmatpush1.bf16.msra.mxu0 %v3948_v57  ;;  %2674 = vmatpush1.bf16.msra.mxu1 %v3951_v58  ;;  %v336_v57 = vrot.slane %v4388_v52, %v335_v54 }
 0x135   :  { %2593 = vmatprep.subr.bf16.mxu0 %v3956_v59  ;;  %2675 = vmatprep.subr.bf16.mxu1 %v3959_v60 }
 0x138   :  { %2594 = vmatpush1.bf16.msra.mxu0 %v3954_v61  ;;  %2676 = vmatpush1.bf16.msra.mxu1 %v3957_v62 }
 0x139   :  { %2595 = vmatprep.subr.bf16.mxu0 %v3962_v63  ;;  %2677 = vmatprep.subr.bf16.mxu1 %v3965_v0 }
 0x13c   :  { %2596 = vmatpush1.bf16.msra.mxu0 %v3960_v1  ;;  %2678 = vmatpush1.bf16.msra.mxu1 %v3963_v2 }
 0x13d   :  { %2597 = vmatprep.subr.bf16.mxu0 %v3968_v3  ;;  %2679 = vmatprep.subr.bf16.mxu1 %v3971_v4 }
 0x140   :  { %2598 = vmatpush1.bf16.msra.mxu0 %v3966_v5  ;;  %2680 = vmatpush1.bf16.msra.mxu1 %v3969_v6 }
 0x141   :  { %2599 = vmatprep.subr.bf16.mxu0 %v3974_v7  ;;  %2681 = vmatprep.subr.bf16.mxu1 %v3977_v8 }
 0x144   :  { %2600 = vmatpush1.bf16.msra.mxu0 %v3972_v9  ;;  %2682 = vmatpush1.bf16.msra.mxu1 %v3975_v10  ;;  %v4032_v9 = vld [vmem:[#allocation7 + $0x200] ss:$16 sps:$4 sm:$0xff]   ;;  %v4035_v10 = vld [vmem:[#allocation7 + $0x208] ss:$16 sps:$4 sm:$0xff]  }
 0x145   :  { %2601 = vmatprep.subr.bf16.mxu0 %v3980_v11  ;;  %2683 = vmatprep.subr.bf16.mxu1 %v3983_v12  ;;  %v4040_v12 = vld [vmem:[#allocation7 + $0x224] ss:$16 sps:$4 sm:$0xff]  }
 0x148   :  { %2602 = vmatpush1.bf16.msra.mxu0 %v3978_v13  ;;  %2684 = vmatpush1.bf16.msra.mxu1 %v3981_v14  ;;  %v4043_v13 = vld [vmem:[#allocation7 + $0x22c] ss:$16 sps:$4 sm:$0xff]  }
 0x149   :  { %2603 = vmatprep.subr.bf16.mxu0 %v3986_v15  ;;  %2685 = vmatprep.subr.bf16.mxu1 %v3989_v16  ;;  %v4038_v15 = vld [vmem:[#allocation7 + $0x220] ss:$16 sps:$4 sm:$0xff]   ;;  %v4041_v16 = vld [vmem:[#allocation7 + $0x228] ss:$16 sps:$4 sm:$0xff]  }
 0x14c   :  { %2604 = vmatpush1.bf16.msra.mxu0 %v3984_v17  ;;  %2686 = vmatpush1.bf16.msra.mxu1 %v3987_v18  ;;  %v4046_v17 = vld [vmem:[#allocation7 + $0x244] ss:$16 sps:$4 sm:$0xff]   ;;  %v4049_v18 = vld [vmem:[#allocation7 + $0x24c] ss:$16 sps:$4 sm:$0xff]  }
 0x14d   :  { %2605 = vmatprep.subr.bf16.mxu0 %v3992_v19  ;;  %2687 = vmatprep.subr.bf16.mxu1 %v3995_v20  ;;  %v4044_v19 = vld [vmem:[#allocation7 + $0x240] ss:$16 sps:$4 sm:$0xff]   ;;  %v4047_v20 = vld [vmem:[#allocation7 + $0x248] ss:$16 sps:$4 sm:$0xff]  }
 0x150   :  { %2606 = vmatpush1.bf16.msra.mxu0 %v3990_v21  ;;  %2688 = vmatpush1.bf16.msra.mxu1 %v3993_v22  ;;  %v4052_v21 = vld [vmem:[#allocation7 + $0x264] ss:$16 sps:$4 sm:$0xff]   ;;  %v4055_v22 = vld [vmem:[#allocation7 + $0x26c] ss:$16 sps:$4 sm:$0xff]  }
 0x151   :  { %2607 = vmatprep.subr.bf16.mxu0 %v3998_v23  ;;  %2689 = vmatprep.subr.bf16.mxu1 %v4001_v24  ;;  %v4050_v23 = vld [vmem:[#allocation7 + $0x260] ss:$16 sps:$4 sm:$0xff]   ;;  %v4053_v24 = vld [vmem:[#allocation7 + $0x268] ss:$16 sps:$4 sm:$0xff]  }
 0x154   :  { %2608 = vmatpush1.bf16.msra.mxu0 %v3996_v25  ;;  %2690 = vmatpush1.bf16.msra.mxu1 %v3999_v26  ;;  %v4058_v25 = vld [vmem:[#allocation7 + $0x284] ss:$16 sps:$4 sm:$0xff]   ;;  %v4061_v26 = vld [vmem:[#allocation7 + $0x28c] ss:$16 sps:$4 sm:$0xff]  }
 0x155   :  { %2609 = vmatprep.subr.bf16.mxu0 %v4004_v27  ;;  %2691 = vmatprep.subr.bf16.mxu1 %v4007_v28  ;;  %v4056_v27 = vld [vmem:[#allocation7 + $0x280] ss:$16 sps:$4 sm:$0xff]   ;;  %v4059_v28 = vld [vmem:[#allocation7 + $0x288] ss:$16 sps:$4 sm:$0xff]  }
 0x158   :  { %2610 = vmatpush1.bf16.msra.mxu0 %v4002_v29  ;;  %2692 = vmatpush1.bf16.msra.mxu1 %v4005_v30  ;;  %v4064_v29 = vld [vmem:[#allocation7 + $0x2a4] ss:$16 sps:$4 sm:$0xff]   ;;  %v4067_v30 = vld [vmem:[#allocation7 + $0x2ac] ss:$16 sps:$4 sm:$0xff]  }
 0x159   :  { %2611 = vmatprep.subr.bf16.mxu0 %v4010_v31  ;;  %2693 = vmatprep.subr.bf16.mxu1 %v4013_v32  ;;  %v4062_v31 = vld [vmem:[#allocation7 + $0x2a0] ss:$16 sps:$4 sm:$0xff]   ;;  %v4065_v32 = vld [vmem:[#allocation7 + $0x2a8] ss:$16 sps:$4 sm:$0xff]  }
 0x15c   :  { %2612 = vmatpush1.bf16.msra.mxu0 %v4008_v33  ;;  %2694 = vmatpush1.bf16.msra.mxu1 %v4011_v34  ;;  %v4070_v33 = vld [vmem:[#allocation7 + $0x2c4] ss:$16 sps:$4 sm:$0xff]   ;;  %v4073_v34 = vld [vmem:[#allocation7 + $0x2cc] ss:$16 sps:$4 sm:$0xff]  }
 0x15d   :  { %2613 = vmatprep.subr.bf16.mxu0 %v4016_v35  ;;  %2695 = vmatprep.subr.bf16.mxu1 %v4019_v36  ;;  %v4068_v35 = vld [vmem:[#allocation7 + $0x2c0] ss:$16 sps:$4 sm:$0xff]   ;;  %v4071_v36 = vld [vmem:[#allocation7 + $0x2c8] ss:$16 sps:$4 sm:$0xff]  }
 0x160   :  { %2614 = vmatpush1.bf16.msra.mxu0 %v4014_v37  ;;  %2696 = vmatpush1.bf16.msra.mxu1 %v4017_v38  ;;  %v4076_v37 = vld [vmem:[#allocation7 + $0x2e4] ss:$16 sps:$4 sm:$0xff]   ;;  %v4079_v38 = vld [vmem:[#allocation7 + $0x2ec] ss:$16 sps:$4 sm:$0xff]  }
 0x161   :  { %2615 = vmatprep.subr.bf16.mxu0 %v4022_v39  ;;  %2697 = vmatprep.subr.bf16.mxu1 %v4025_v40  ;;  %v4074_v39 = vld [vmem:[#allocation7 + $0x2e0] ss:$16 sps:$4 sm:$0xff]   ;;  %v4077_v40 = vld [vmem:[#allocation7 + $0x2e8] ss:$16 sps:$4 sm:$0xff]  }
 0x164   :  { %2616 = vmatpush1.bf16.msra.mxu0 %v4020_v41  ;;  %2698 = vmatpush1.bf16.msra.mxu1 %v4023_v42  ;;  %v4082_v41 = vld [vmem:[#allocation7 + $0x304] ss:$16 sps:$4 sm:$0xff]   ;;  %v4085_v42 = vld [vmem:[#allocation7 + $0x30c] ss:$16 sps:$4 sm:$0xff]  }
 0x165   :  { %2617 = vmatprep.subr.bf16.mxu0 %v4028_v43  ;;  %2699 = vmatprep.subr.bf16.mxu1 %v4031_v44  ;;  %v4080_v43 = vld [vmem:[#allocation7 + $0x300] ss:$16 sps:$4 sm:$0xff]   ;;  %v4083_v44 = vld [vmem:[#allocation7 + $0x308] ss:$16 sps:$4 sm:$0xff]  }
 0x168   :  { %2618 = vmatpush1.bf16.msra.mxu0 %v4026_v45  ;;  %2700 = vmatpush1.bf16.msra.mxu1 %v4029_v46  ;;  %v4088_v45 = vld [vmem:[#allocation7 + $0x324] ss:$16 sps:$4 sm:$0xff]   ;;  %v4091_v46 = vld [vmem:[#allocation7 + $0x32c] ss:$16 sps:$4 sm:$0xff]  }
 0x169   :  { %2628 = vmatprep.subr.bf16.mxu0 %v4034_v47  ;;  %2710 = vmatprep.subr.bf16.mxu1 %v4037_v48  ;;  %v4086_v47 = vld [vmem:[#allocation7 + $0x320] ss:$16 sps:$4 sm:$0xff]   ;;  %v4089_v48 = vld [vmem:[#allocation7 + $0x328] ss:$16 sps:$4 sm:$0xff]  }
 0x1fe   :  { %v1618_v58 = vpop.f32.mrb[0].mxu0  ;;  %v4401_v59 = vpop.f32.mrb[0].mxu1 }
 0x1ff   :  { %v3550_v60 = vadd.f32 %v1618_v58, %v324_v55  ;;  %v1620_v61 = vpop.f32.mrb[1].mxu0  ;;  %v1784_v62 = vpop.f32.mrb[1].mxu1  ;;  %v4097_v55 = vld [vmem:[#allocation7 + $0x34c] ss:$16 sps:$4 sm:$0xff]   ;;  %v4100_v58 = vld [vmem:[#allocation7 + $0x364] ss:$16 sps:$4 sm:$0xff]  }
 0x200   :  { %v3551_v63 = vadd.f32 %v1620_v61, %v328_v56  ;;  %v3553_v0 = vadd.f32 %v1784_v62, %v336_v57  ;;  %v1622_v1 = vpop.f32.mrb[2].mxu0  ;;  %v1786_v2 = vpop.f32.mrb[2].mxu1  ;;  %v4092_v56 = vld [vmem:[#allocation7 + $0x340] ss:$16 sps:$4 sm:$0xff]   ;;  %v4095_v57 = vld [vmem:[#allocation7 + $0x348] ss:$16 sps:$4 sm:$0xff]  }
 0x201   :  { %v1789_v3 = vmax.f32 %v3550_v60, 0.0  ;;  %v1623_v4 = vpop.f32.mrb[3].mxu0  ;;  %v1787_v5 = vpop.f32.mrb[3].mxu1  ;;  %v4103_v60 = vld [vmem:[#allocation7 + $0x36c] ss:$16 sps:$4 sm:$0xff]  }
 0x202   :  { %v1790_v6 = vmax.f32 %v3551_v63, 0.0  ;;  %v1792_v7 = vmax.f32 %v3553_v0, 0.0  ;;  %v4098_v61 = vld [vmem:[#allocation7 + $0x360] ss:$16 sps:$4 sm:$0xff]   ;;  %v4101_v62 = vld [vmem:[#allocation7 + $0x368] ss:$16 sps:$4 sm:$0xff]  }
 0x203   :  { %v1793_v11 = vpack.c.bf16 %v1789_v3, %v1789_v3  ;;  %v4106_v63 = vld [vmem:[#allocation7 + $0x384] ss:$16 sps:$4 sm:$0xff]   ;;  %v4109_v0 = vld [vmem:[#allocation7 + $0x38c] ss:$16 sps:$4 sm:$0xff]   ;;  %v4104_v1 = vld [vmem:[#allocation7 + $0x380] ss:$16 sps:$4 sm:$0xff]  }
 0x204   :  { %v1794_v8 = vpack.c.bf16 %v1790_v6, %v1790_v6  ;;  %v1796_v14 = vpack.c.bf16 %v1792_v7, %v1792_v7  ;;  %v4107_v2 = vld [vmem:[#allocation7 + $0x388] ss:$16 sps:$4 sm:$0xff]   ;;  %v331_v3 = vsub.s32 2, %v4382_v50  ;;  %v4112_v4 = vld [vmem:[#allocation7 + $0x3a4] ss:$16 sps:$4 sm:$0xff]  }
 0x205   :  { %v4115_v5 = vld [vmem:[#allocation7 + $0x3ac] ss:$16 sps:$4 sm:$0xff]   ;;  %v4110_v6 = vld [vmem:[#allocation7 + $0x3a0] ss:$16 sps:$4 sm:$0xff]   ;;  %v4113_v7 = vld [vmem:[#allocation7 + $0x3a8] ss:$16 sps:$4 sm:$0xff]  }
 0x206   :  { %2619 = vmatprep.mubr.bf16.mxu0 %v1794_v8  ;;  %2701 = vmatprep.mubr.bf16.mxu1 %v1794_v8  ;;  %v332_v8 = vrot.slane %v4388_v52, %v331_v3  ;;  %v4128_v52 = vld [vmem:[#allocation8 + $0x40] sm:$0xff]  }
 0x207   :  { %2620 = vmatmul.mubr.bf16.vlgmr.msra.gmra.mrb[4].mxu0 %v1793_v11  ;;  %2702 = vmatmul.mubr.bf16.vlgmr.msra.gmra.mrb[4].mxu1 %v1793_v11  ;;  %v4116_v11 = vld [vmem:[#allocation7 + $0x3c0] ss:$16 sps:$4 sm:$0xff]  }
 0x208   :  { %2629 = vmatpush1.bf16.msra.mxu0 %v4032_v9  ;;  %2711 = vmatpush1.bf16.msra.mxu1 %v4035_v10  ;;  %v4118_v9 = vld [vmem:[#allocation7 + $0x3c4] ss:$16 sps:$4 sm:$0xff]   ;;  %v4121_v10 = vld [vmem:[#allocation7 + $0x3cc] ss:$16 sps:$4 sm:$0xff]  }
 0x209   :  { %2660 = vmatprep.mubr.bf16.mxu0 %v1796_v14  ;;  %2742 = vmatprep.mubr.bf16.mxu1 %v1796_v14  ;;  %v4124_v14 = vld [vmem:[#allocation7 + $0x3e4] ss:$16 sps:$4 sm:$0xff]  }
 0x20a   :  { %2630 = vmatprep.subr.bf16.mxu0 %v4040_v12  ;;  %2712 = vmatprep.subr.bf16.mxu1 %v4043_v13  ;;  %v4119_v12 = vld [vmem:[#allocation7 + $0x3c8] ss:$16 sps:$4 sm:$0xff]   ;;  %v3552_v13 = vadd.f32 %v4401_v59, %v332_v8 }
 0x20b   :  { %v4132_v59 = vld [vmem:[#allocation8 + $0x48] sm:$0xff]  }
 0x20c   :  { %2631 = vmatpush1.bf16.msra.mxu0 %v4038_v15  ;;  %2713 = vmatpush1.bf16.msra.mxu1 %v4041_v16  ;;  %v4127_v15 = vld [vmem:[#allocation7 + $0x3ec] ss:$16 sps:$4 sm:$0xff]   ;;  %v4122_v16 = vld [vmem:[#allocation7 + $0x3e0] ss:$16 sps:$4 sm:$0xff]  }
 0x20d   :  { %2632 = vmatprep.subr.bf16.mxu0 %v4046_v17  ;;  %2714 = vmatprep.subr.bf16.mxu1 %v4049_v18  ;;  %v4125_v17 = vld [vmem:[#allocation7 + $0x3e8] ss:$16 sps:$4 sm:$0xff]   ;;  %v1791_v18 = vmax.f32 %v3552_v13, 0.0 }
 0x210   :  { %2633 = vmatpush1.bf16.msra.mxu0 %v4044_v19  ;;  %2715 = vmatpush1.bf16.msra.mxu1 %v4047_v20  ;;  %v4129_v19 = vld [vmem:[#allocation8 + $0xc0] sm:$0xff]  }
 0x211   :  { %2634 = vmatprep.subr.bf16.mxu0 %v4052_v21  ;;  %2716 = vmatprep.subr.bf16.mxu1 %v4055_v22  ;;  %v4130_v20 = vld [vmem:[#allocation8] sm:$0xff]   ;;  %v1795_v22 = vpack.c.bf16 %v1791_v18, %v1791_v18 }
 0x212   :  { %v4131_v21 = vld [vmem:[#allocation8 + $0x80] sm:$0xff]  }
 0x214   :  { %2635 = vmatpush1.bf16.msra.mxu0 %v4050_v23  ;;  %2717 = vmatpush1.bf16.msra.mxu1 %v4053_v24  ;;  %v4133_v23 = vld [vmem:[#allocation8 + $0xc8] sm:$0xff]  }
 0x215   :  { %2636 = vmatprep.subr.bf16.mxu0 %v4058_v25  ;;  %2718 = vmatprep.subr.bf16.mxu1 %v4061_v26  ;;  %v4134_v24 = vld [vmem:[#allocation8 + $0x8] sm:$0xff]   ;;  %v4136_v26 = vld [vmem:[#allocation8 + $0x50] sm:$0xff]  }
 0x216   :  { %v4135_v25 = vld [vmem:[#allocation8 + $0x88] sm:$0xff]  }
 0x218   :  { %2637 = vmatpush1.bf16.msra.mxu0 %v4056_v27  ;;  %2719 = vmatpush1.bf16.msra.mxu1 %v4059_v28  ;;  %v4137_v27 = vld [vmem:[#allocation8 + $0xd0] sm:$0xff]  }
 0x219   :  { %2638 = vmatprep.subr.bf16.mxu0 %v4064_v29  ;;  %2720 = vmatprep.subr.bf16.mxu1 %v4067_v30  ;;  %v4138_v28 = vld [vmem:[#allocation8 + $0x10] sm:$0xff]   ;;  %v4140_v30 = vld [vmem:[#allocation8 + $0x58] sm:$0xff]  }
 0x21a   :  { %v4139_v29 = vld [vmem:[#allocation8 + $0x90] sm:$0xff]  }
 0x21c   :  { %2639 = vmatpush1.bf16.msra.mxu0 %v4062_v31  ;;  %2721 = vmatpush1.bf16.msra.mxu1 %v4065_v32  ;;  %v4141_v31 = vld [vmem:[#allocation8 + $0xd8] sm:$0xff]  }
 0x21d   :  { %2640 = vmatprep.subr.bf16.mxu0 %v4070_v33  ;;  %2722 = vmatprep.subr.bf16.mxu1 %v4073_v34  ;;  %v4142_v32 = vld [vmem:[#allocation8 + $0x18] sm:$0xff]   ;;  %v4144_v34 = vld [vmem:[#allocation8 + $0x60] sm:$0xff]  }
 0x21e   :  { %v4143_v33 = vld [vmem:[#allocation8 + $0x98] sm:$0xff]  }
 0x220   :  { %2641 = vmatpush1.bf16.msra.mxu0 %v4068_v35  ;;  %2723 = vmatpush1.bf16.msra.mxu1 %v4071_v36  ;;  %v4145_v35 = vld [vmem:[#allocation8 + $0xe0] sm:$0xff]  }
 0x221   :  { %2642 = vmatprep.subr.bf16.mxu0 %v4076_v37  ;;  %2724 = vmatprep.subr.bf16.mxu1 %v4079_v38  ;;  %v4146_v36 = vld [vmem:[#allocation8 + $0x20] sm:$0xff]   ;;  %v4148_v38 = vld [vmem:[#allocation8 + $0x68] sm:$0xff]  }
 0x222   :  { %v4147_v37 = vld [vmem:[#allocation8 + $0xa0] sm:$0xff]  }
 0x224   :  { %2643 = vmatpush1.bf16.msra.mxu0 %v4074_v39  ;;  %2725 = vmatpush1.bf16.msra.mxu1 %v4077_v40  ;;  %v4149_v39 = vld [vmem:[#allocation8 + $0xe8] sm:$0xff]  }
 0x225   :  { %2644 = vmatprep.subr.bf16.mxu0 %v4082_v41  ;;  %2726 = vmatprep.subr.bf16.mxu1 %v4085_v42  ;;  %v4150_v40 = vld [vmem:[#allocation8 + $0x28] sm:$0xff]   ;;  %v4152_v42 = vld [vmem:[#allocation8 + $0x70] sm:$0xff]  }
 0x226   :  { %v4151_v41 = vld [vmem:[#allocation8 + $0xa8] sm:$0xff]  }
 0x228   :  { %2645 = vmatpush1.bf16.msra.mxu0 %v4080_v43  ;;  %2727 = vmatpush1.bf16.msra.mxu1 %v4083_v44  ;;  %v4153_v43 = vld [vmem:[#allocation8 + $0xf0] sm:$0xff]  }
 0x229   :  { %2646 = vmatprep.subr.bf16.mxu0 %v4088_v45  ;;  %2728 = vmatprep.subr.bf16.mxu1 %v4091_v46  ;;  %v4154_v44 = vld [vmem:[#allocation8 + $0x30] sm:$0xff]   ;;  %v4156_v46 = vld [vmem:[#allocation8 + $0x78] sm:$0xff]  }
 0x22a   :  { %v4155_v45 = vld [vmem:[#allocation8 + $0xb0] sm:$0xff]  }
 0x22c   :  { %2647 = vmatpush1.bf16.msra.mxu0 %v4086_v47  ;;  %2729 = vmatpush1.bf16.msra.mxu1 %v4089_v48  ;;  %v4157_v47 = vld [vmem:[#allocation8 + $0xf8] sm:$0xff]  }
 0x22d   :  { %2648 = vmatprep.subr.bf16.mxu0 %v4094_v49  ;;  %2730 = vmatprep.subr.bf16.mxu1 %v4097_v55  ;;  %v4158_v48 = vld [vmem:[#allocation8 + $0x38] sm:$0xff]   ;;  %v1925_v55 = vld [vmem:[%s4438_s4] sm:$0xf] }
 0x22e   :  { %v4159_v49 = vld [vmem:[#allocation8 + $0xb8] sm:$0xff]  }
 0x230   :  { %2649 = vmatpush1.bf16.msra.mxu0 %v4092_v56  ;;  %2731 = vmatpush1.bf16.msra.mxu1 %v4095_v57  ;;  %v1930_v56 = vrot.slane %v1925_v55, %v323_v51  ;;  %v1938_v57 = vrot.slane %v1925_v55, %v331_v3 }
 0x231   :  { %2650 = vmatprep.subr.bf16.mxu0 %v4100_v58  ;;  %2732 = vmatprep.subr.bf16.mxu1 %v4103_v60  ;;  %v1934_v58 = vrot.slane %v1925_v55, %v327_v53  ;;  %v1942_v60 = vrot.slane %v1925_v55, %v335_v54 }
 0x234   :  { %2651 = vmatpush1.bf16.msra.mxu0 %v4098_v61  ;;  %2733 = vmatpush1.bf16.msra.mxu1 %v4101_v62 }
 0x235   :  { %2652 = vmatprep.subr.bf16.mxu0 %v4106_v63  ;;  %2734 = vmatprep.subr.bf16.mxu1 %v4109_v0 }
 0x238   :  { %2653 = vmatpush1.bf16.msra.mxu0 %v4104_v1  ;;  %2735 = vmatpush1.bf16.msra.mxu1 %v4107_v2 }
 0x239   :  { %2654 = vmatprep.subr.bf16.mxu0 %v4112_v4  ;;  %2736 = vmatprep.subr.bf16.mxu1 %v4115_v5 }
 0x23c   :  { %2655 = vmatpush1.bf16.msra.mxu0 %v4110_v6  ;;  %2737 = vmatpush1.bf16.msra.mxu1 %v4113_v7 }
 0x23d   :  { %2656 = vmatprep.subr.bf16.mxu0 %v4118_v9  ;;  %2738 = vmatprep.subr.bf16.mxu1 %v4121_v10 }
 0x240   :  { %2657 = vmatpush1.bf16.msra.mxu0 %v4116_v11  ;;  %2739 = vmatpush1.bf16.msra.mxu1 %v4119_v12 }
 0x241   :  { %2658 = vmatprep.subr.bf16.mxu0 %v4124_v14  ;;  %2740 = vmatprep.subr.bf16.mxu1 %v4127_v15  ;;  %v3473_v15 = vld [vmem:[%s4440_s6] ss:$0 sm:$0xff] }
 0x244   :  { %2659 = vmatpush1.bf16.msra.mxu0 %v4122_v16  ;;  %2741 = vmatpush1.bf16.msra.mxu1 %v4125_v17 }
 0x245   :  { %3506 = vmatprep.subr.bf16.mxu0 %v4128_v52  ;;  %3528 = vmatprep.subr.bf16.mxu1 %v4129_v19 }
 0x247   :  { %2661 = vmatmul.mubr.bf16.vlgmr.msra.gmra.mrb[4].mxu0 %v1795_v22  ;;  %2743 = vmatmul.mubr.bf16.vlgmr.msra.gmra.mrb[4].mxu1 %v1795_v22 }
 0x248   :  { %3507 = vmatpush3.bf16.msra.mxu0 %v4130_v20  ;;  %3529 = vmatpush3.bf16.msra.mxu1 %v4131_v21 }
 0x249   :  { %3508 = vmatprep.subr.bf16.mxu0 %v4132_v59  ;;  %3530 = vmatprep.subr.bf16.mxu1 %v4133_v23 }
 0x24c   :  { %3509 = vmatpush3.bf16.msra.mxu0 %v4134_v24  ;;  %3531 = vmatpush3.bf16.msra.mxu1 %v4135_v25 }
 0x24d   :  { %3510 = vmatprep.subr.bf16.mxu0 %v4136_v26  ;;  %3532 = vmatprep.subr.bf16.mxu1 %v4137_v27 }
 0x250   :  { %3511 = vmatpush3.bf16.msra.mxu0 %v4138_v28  ;;  %3533 = vmatpush3.bf16.msra.mxu1 %v4139_v29 }
 0x251   :  { %3512 = vmatprep.subr.bf16.mxu0 %v4140_v30  ;;  %3534 = vmatprep.subr.bf16.mxu1 %v4141_v31 }
 0x254   :  { %3513 = vmatpush3.bf16.msra.mxu0 %v4142_v32  ;;  %3535 = vmatpush3.bf16.msra.mxu1 %v4143_v33 }
 0x255   :  { %3514 = vmatprep.subr.bf16.mxu0 %v4144_v34  ;;  %3536 = vmatprep.subr.bf16.mxu1 %v4145_v35 }
 0x258   :  { %3515 = vmatpush3.bf16.msra.mxu0 %v4146_v36  ;;  %3537 = vmatpush3.bf16.msra.mxu1 %v4147_v37 }
 0x259   :  { %3516 = vmatprep.subr.bf16.mxu0 %v4148_v38  ;;  %3538 = vmatprep.subr.bf16.mxu1 %v4149_v39 }
 0x25c   :  { %3517 = vmatpush3.bf16.msra.mxu0 %v4150_v40  ;;  %3539 = vmatpush3.bf16.msra.mxu1 %v4151_v41 }
 0x25d   :  { %3518 = vmatprep.subr.bf16.mxu0 %v4152_v42  ;;  %3540 = vmatprep.subr.bf16.mxu1 %v4153_v43 }
 0x260   :  { %3519 = vmatpush3.bf16.msra.mxu0 %v4154_v44  ;;  %3541 = vmatpush3.bf16.msra.mxu1 %v4155_v45 }
 0x261   :  { %3520 = vmatprep.subr.bf16.mxu0 %v4156_v46  ;;  %3542 = vmatprep.subr.bf16.mxu1 %v4157_v47 }
 0x264   :  { %3521 = vmatpush3.bf16.msra.mxu0 %v4158_v48  ;;  %3543 = vmatpush3.bf16.msra.mxu1 %v4159_v49 }
 0x31a   :  { %v2662_v61 = vpop.f32.mrb[4].mxu0  ;;  %v2744_v62 = vpop.f32.mrb[4].mxu1 }
 0x31b   :  { %v3554_v63 = vadd.f32 %v2662_v61, %v1930_v56  ;;  %v3556_v0 = vadd.f32 %v2744_v62, %v1938_v57  ;;  %v2664_v1 = vpop.f32.mrb[5].mxu0  ;;  %v2746_v2 = vpop.f32.mrb[5].mxu1 }
 0x31c   :  { %v3555_v4 = vadd.f32 %v2664_v1, %v1934_v58  ;;  %v3557_v5 = vadd.f32 %v2746_v2, %v1942_v60  ;;  %v2666_v6 = vpop.f32.mrb[6].mxu0  ;;  %v2748_v7 = vpop.f32.mrb[6].mxu1 }
 0x31d   :  { %v2751_v51 = vmax.f32 %v3554_v63, 0.0  ;;  %v2753_v8 = vmax.f32 %v3556_v0, 0.0  ;;  %v2667_v9 = vpop.f32.mrb[7].mxu0  ;;  %v2749_v3 = vpop.f32.mrb[7].mxu1 }
 0x31e   :  { %v2752_v10 = vmax.f32 %v3555_v4, 0.0  ;;  %v2754_v11 = vmax.f32 %v3557_v5, 0.0 }
 0x31f   :  { %v2755_v50 = vpack.c.bf16 %v2751_v51, %v2751_v51  ;;  %v2757_v54 = vpack.c.bf16 %v2753_v8, %v2753_v8 }
 0x320   :  { %v2756_v53 = vpack.c.bf16 %v2752_v10, %v2752_v10  ;;  %v2758_v12 = vpack.c.bf16 %v2754_v11, %v2754_v11 }
 0x322   :  { %3054 = vmatprep.mubr.bf16.mxu0 %v2756_v53  ;;  %3094 = vmatprep.mubr.bf16.mxu1 %v2758_v12 }
 0x323   :  { %3055 = vmatmul.mubr.bf16.vlgmr.msra.gmra.mrb[8].mxu0 %v2755_v50  ;;  %3095 = vmatmul.mubr.bf16.vlgmr.msra.gmra.mrb[8].mxu1 %v2757_v54 }
 0x3f6   :  { %v3522_v13 = vpop.f32.mrb[8].mxu0  ;;  %v3544_v14 = vpop.f32.mrb[8].mxu1 }
 0x3f7   :  { %v3523_v16 = vpop.f32.mrb[9].mxu0  ;;  %v3545_v17 = vpop.f32.mrb[9].mxu1 }
 0x3f8   :  { %v3524_v18 = vadd.f32 %v3523_v16, %v3522_v13  ;;  %v3546_v52 = vadd.f32 %v3545_v17, %v3544_v14  ;;  %v3525_v19 = vpop.f32.mrb[10].mxu0  ;;  %v3547_v20 = vpop.f32.mrb[10].mxu1 }
 0x3f9   :  { %v3526_v21 = vpop.f32.mrb[11].mxu0  ;;  %v3548_v22 = vpop.f32.mrb[11].mxu1 }
 0x3fa   :  { %v3057_v59 = vadd.f32 %v3524_v18, %v3473_v15 }
 0x3fc   :  { %v3097_v23 = vadd.f32 %v3546_v52, %v3057_v59 }
 0x3fe   :  { %v3102_v24 = vpack.c.bf16 %v3097_v23, %v3097_v23 }
 0x400   :  { %3103 = vst [vmem:[#allocation10] sm:$0xf] %v3102_v24 }
 0x401   :  { %4259 = shalt.err (!%p4256_p8)
}
 0x402   :  { %s4260_s10 = scalar_lea.hbm %s4441_s7, 64 }
 0x403   :  { %p4261_p9 = scmp.ne.s32.totalorder %s4441_s7, %s4260_s10  ;;  %p4264_p10 = scmp.lt.u32.totalorder %s4260_s10, %s4441_s7 }
 0x405   :  { %p4266_p11 = pnand %p4264_p10, %p4261_p9 }
 0x407   :  { %4269 = shalt.err (!%p4266_p11)
}
 0x408   :  { %3113 = dma.vmem_to_hbm [thread:$0]  %s3111_s30, 64, %s4441_s7, [#allocation4]  }
 0x409   :  { %4276 = dma.done.wait [#allocation4], 64  }
 0x40a   :  { %4277 = vsyncadd [#allocation4], 4294967232 }
 0x40b   :  { %3117 = vsyncpa [#allocation3], 1 }
 0x40c   :  { %3118 = vsyncpa [#allocation6], 1 }
 0x40d   :  { %3119 = vsyncpa [#allocation9], 1 }
 0x40e   :  { %3120 = vsyncpa [#allocation4], 1 }

</bundles_post_ra>
